<compile_context>
chip_gen: v7x
topology: tpu7x:2x2x1
jax: 0.10.0
libtpu: 0.0.40
codegen_flags: <defaults>
</compile_context>

<pallas_src>
import numpy as np

import jax
import jax.numpy as jnp
from jax.experimental import pallas as pl
from jax.experimental.pallas import tpu as pltpu


# ----------------------------------------------------------------------------- model config
PARAMS = dict(
    input_features=4,
    no_blocks=2,
    cat_features=True,
    use_skip=True,
    enc_channels=[8, 16],
    enc_kernel_size=[3, 3],
    enc_no_layers=2,
    enc_pooling="max_pool",
    enc_pooling_stride=[2, 2],
    enc_use_norm=False,
    trans_layers=2,
    trans_channels=[16, 16],
    trans_kernel_size=[3, 3],
    dec_channels=[16, 8],
    dec_up_output_channels=[16, 16],          # unused with 'upsample'
    dec_conv_input_channels=[32, 24],
    dec_kernel_size=[3, 3],
    dec_no_layers=2,
    dec_upconv_type="upsample",
    dec_upconv_stride=[2, 2],
    dec_use_norm=False,
    output_channels=2,
    use_separate_input=False,
)
# activations: enc/trans/dec = ReLU, output_func = sigmoid.


def init_conv(key, cout, cin, k):
    kw, kb = jax.random.split(key)
    w = jax.random.normal(kw, (cout, cin, k), jnp.float32) * 0.1
    b = jax.random.normal(kb, (cout,), jnp.float32) * 0.05
    return w, b


def init_weights(key, p):
    weights = {"enc": [], "trans": [], "trans_bn": [], "dec": []}
    enc_ch = [p["input_features"]] + p["enc_channels"]
    for blk in range(p["no_blocks"]):
        chans = [enc_ch[blk]] + p["enc_no_layers"] * [enc_ch[blk + 1]]
        layers = []
        for i in range(p["enc_no_layers"]):
            key, sub = jax.random.split(key)
            layers.append(init_conv(sub, chans[i + 1], chans[i],
                                    p["enc_kernel_size"][blk]))
        weights["enc"].append(layers)

    trans_ch = [enc_ch[-1]] + p["trans_channels"]
    for i in range(p["trans_layers"]):
        key, sub = jax.random.split(key)
        weights["trans"].append(init_conv(sub, trans_ch[i + 1], trans_ch[i],
                                          p["trans_kernel_size"][i]))
        # torch BatchNorm1d default init: weight=1, bias=0
        weights["trans_bn"].append((jnp.ones((trans_ch[i],), jnp.float32),
                                    jnp.zeros((trans_ch[i],), jnp.float32)))

    dec_ch = [enc_ch[-1]] + p["dec_channels"]
    for blk in range(p["no_blocks"]):
        chans = [p["dec_conv_input_channels"][blk]] + \
                p["dec_no_layers"] * [dec_ch[blk + 1]]
        layers = []
        for i in range(p["dec_no_layers"]):
            key, sub = jax.random.split(key)
            layers.append(init_conv(sub, chans[i + 1], chans[i],
                                    p["dec_kernel_size"][blk]))
        weights["dec"].append(layers)

    out_in = dec_ch[-1] + (enc_ch[0] if p["use_skip"] else 0)
    key, sub = jax.random.split(key)
    weights["out"] = init_conv(sub, p["output_channels"], out_in, 3)
    return weights


# ----------------------------------------------------------------------------- constant matrices
def _shift_matrices(B, L):
    """Per-batch lane-shift matrices with zero boundary for the +/-1 taps of a K=3 conv."""
    mn = np.zeros((B * L, B * L), np.float32)   # Z[:, p] = X[:, p-1]  (zero at l==0)
    mp = np.zeros((B * L, B * L), np.float32)   # Z[:, p] = X[:, p+1]  (zero at l==L-1)
    for b in range(B):
        for l in range(L):
            if l - 1 >= 0:
                mn[b * L + l - 1, b * L + l] = 1.0
            if l + 1 < L:
                mp[b * L + l + 1, b * L + l] = 1.0
    return jnp.asarray(mn), jnp.asarray(mp)


def _pool_matrices(B, L, stride):
    """Even/odd lane-selection matrices for MaxPool1d(kernel=stride=2)."""
    assert stride == 2, "kernel specialised for stride-2 max pooling"
    Lo = L // stride
    me = np.zeros((B * L, B * Lo), np.float32)
    mo = np.zeros((B * L, B * Lo), np.float32)
    for b in range(B):
        for j in range(Lo):
            me[b * L + 2 * j, b * Lo + j] = 1.0
            mo[b * L + 2 * j + 1, b * Lo + j] = 1.0
    return jnp.asarray(me), jnp.asarray(mo)


def _upsample_matrix(B, L, scale):
    """torch.nn.Upsample(scale_factor=scale, mode='linear', align_corners=False) as a matmul."""
    Lo = L * scale
    u = np.zeros((B * L, B * Lo), np.float32)
    for i in range(Lo):
        coord = max((i + 0.5) / scale - 0.5, 0.0)
        i0 = min(int(np.floor(coord)), L - 1)
        i1 = min(i0 + 1, L - 1)
        lam = coord - i0
        for b in range(B):
            u[b * L + i0, b * Lo + i] += 1.0 - lam
            u[b * L + i1, b * Lo + i] += lam
    return jnp.asarray(u)


def _prep_w(w):   # (Cout, Cin, K) -> (K, Cout, Cin): one matmul matrix per tap
    return jnp.transpose(w, (2, 0, 1))


def _prep_b(b):   # (C,) -> (C, 1) for lane-broadcast bias add
    return b.reshape(-1, 1)


# ----------------------------------------------------------------------------- fused Pallas kernel
def _unet_kernel(
    x_ref,
    s0n_ref, s0p_ref, s1n_ref, s1p_ref, s2n_ref, s2p_ref,
    p0e_ref, p0o_ref, p1e_ref, p1o_ref,
    u2_ref, u1_ref,
    e00w_ref, e00b_ref, e01w_ref, e01b_ref,
    e10w_ref, e10b_ref, e11w_ref, e11b_ref,
    bn0g_ref, bn0b_ref, t0w_ref, t0b_ref,
    bn1g_ref, bn1b_ref, t1w_ref, t1b_ref,
    d00wa_ref, d00wb_ref, d00b_ref, d01w_ref, d01b_ref,
    d10wa_ref, d10wb_ref, d10b_ref, d11w_ref, d11b_ref,
    ow_a_ref, ow_b_ref, ob_ref,
    o_ref,
):
    f32 = jnp.float32

    def conv(parts, w_refs, b_ref, sneg, spos, act):
        """'same' zero-padded K=3 conv: y = sum_k W_k @ shift_k(x) + b, fused activation.

        `parts`/`w_refs` lists realise channel-concatenated inputs without a concat op."""
        cout = w_refs[0].shape[1]
        bl = parts[0].shape[1]
        acc = jnp.zeros((cout, bl), f32)
        for xp, wr in zip(parts, w_refs):
            k_taps = wr.shape[0]
            pad = k_taps // 2
            for k in range(k_taps):                      # static unroll (K = 3)
                s = k - pad
                if s == 0:
                    z = xp
                else:
                    z = jnp.dot(xp, sneg if s < 0 else spos,
                                preferred_element_type=f32)
                acc = acc + jnp.dot(wr[k], z, preferred_element_type=f32)
        acc = acc + b_ref[...]
        if act == "relu":
            return jnp.maximum(acc, 0.0)
        if act == "sigmoid":
            return jax.nn.sigmoid(acc)
        return acc

    def batchnorm(x, g_ref, b_ref, eps=1e-5):
        # training-mode BatchNorm1d: per-channel stats over (batch, length) == lane axis
        mu = jnp.mean(x, axis=1, keepdims=True)
        xc = x - mu
        var = jnp.mean(xc * xc, axis=1, keepdims=True)
        return xc * jax.lax.rsqrt(var + eps) * g_ref[...] + b_ref[...]

    def maxpool(x, sel_even, sel_odd):
        return jnp.maximum(jnp.dot(x, sel_even, preferred_element_type=f32),
                           jnp.dot(x, sel_odd, preferred_element_type=f32))

    def upsample(x, u):
        return jnp.dot(x, u, preferred_element_type=f32)

    # hoist constant-matrix loads (one VMEM read each, reused across layers)
    s0n, s0p = s0n_ref[...], s0p_ref[...]
    s1n, s1p = s1n_ref[...], s1p_ref[...]
    s2n, s2p = s2n_ref[...], s2p_ref[...]
    p0e, p0o = p0e_ref[...], p0o_ref[...]
    p1e, p1o = p1e_ref[...], p1o_ref[...]
    u2, u1 = u2_ref[...], u1_ref[...]

    x0 = x_ref[...]                                            # (4, 32)   level 0 (L=16)

    # ---------------------------------------------------------------- encoder
    h = conv([x0], [e00w_ref], e00b_ref, s0n, s0p, "relu")
    enc0 = conv([h], [e01w_ref], e01b_ref, s0n, s0p, "relu")   # (8, 32)
    h = maxpool(enc0, p0e, p0o)                                # (8, 16)   level 1 (L=8)

    h = conv([h], [e10w_ref], e10b_ref, s1n, s1p, "relu")
    enc1 = conv([h], [e11w_ref], e11b_ref, s1n, s1p, "relu")   # (16, 16)
    h = maxpool(enc1, p1e, p1o)                                # (16, 8)   level 2 (L=4)

    # ---------------------------------------------------------------- transition (BN -> conv -> ReLU) x2
    h = batchnorm(h, bn0g_ref, bn0b_ref)
    h = conv([h], [t0w_ref], t0b_ref, s2n, s2p, "relu")
    h = batchnorm(h, bn1g_ref, bn1b_ref)
    h = conv([h], [t1w_ref], t1b_ref, s2n, s2p, "relu")        # (16, 8)

    # ---------------------------------------------------------------- decoder (concat folded into split weights)
    h = upsample(h, u2)                                        # (16, 16)  level 1
    h = conv([h, enc1], [d00wa_ref, d00wb_ref], d00b_ref, s1n, s1p, "relu")
    h = conv([h], [d01w_ref], d01b_ref, s1n, s1p, "relu")      # (16, 16)

    h = upsample(h, u1)                                        # (16, 32)  level 0
    h = conv([h, enc0], [d10wa_ref, d10wb_ref], d10b_ref, s0n, s0p, "relu")
    h = conv([h], [d11w_ref], d11b_ref, s0n, s0p, "relu")      # (8, 32)

    # ---------------------------------------------------------------- output layer (+ input skip, sigmoid)
    o_ref[...] = conv([h, x0], [ow_a_ref, ow_b_ref], ob_ref, s0n, s0p, "sigmoid")


# ----------------------------------------------------------------------------- forward wrapper
def unet_forward(weights, x, p=PARAMS):
    # Specialised to the PARAMS config above (2 blocks, 2 layers/block, K=3, stride-2 pool/upsample).
    assert all(k == 3 for k in
               p["enc_kernel_size"] + p["trans_kernel_size"] + p["dec_kernel_size"])
    B, cin, L = x.shape
    sp0, sp1 = p["enc_pooling_stride"]
    L0, L1, L2 = L, L // sp0, L // (sp0 * sp1)
    BL0 = B * L0

    # lane-dense activation layout: (channels, batch*length)
    x2d = jnp.transpose(x, (1, 0, 2)).reshape(cin, BL0)

    # constant geometry matrices (conv halo shift / pool select / linear upsample)
    s0n, s0p = _shift_matrices(B, L0)
    s1n, s1p = _shift_matrices(B, L1)
    s2n, s2p = _shift_matrices(B, L2)
    p0e, p0o = _pool_matrices(B, L0, sp0)
    p1e, p1o = _pool_matrices(B, L1, sp1)
    u2 = _upsample_matrix(B, L2, p["dec_upconv_stride"][0])
    u1 = _upsample_matrix(B, L1, p["dec_upconv_stride"][1])

    enc_ch = [p["input_features"]] + p["enc_channels"]          # [4, 8, 16]
    dec_ch = [enc_ch[-1]] + p["dec_channels"]                   # [16, 16, 8]

    (e00w, e00b), (e01w, e01b) = weights["enc"][0]
    (e10w, e10b), (e11w, e11b) = weights["enc"][1]
    (t0w, t0b), (t1w, t1b) = weights["trans"]
    (bn0g, bn0b), (bn1g, bn1b) = weights["trans_bn"]
    (d00w, d00b), (d01w, d01b) = weights["dec"][0]
    (d10w, d10b), (d11w, d11b) = weights["dec"][1]
    ow, ob = weights["out"]

    # fold channel concats into the following conv by splitting its weight along Cin
    c0, c1, co = dec_ch[0], dec_ch[1], dec_ch[-1]
    d00wa, d00wb = d00w[:, :c0, :], d00w[:, c0:, :]   # [upsampled | enc1]
    d10wa, d10wb = d10w[:, :c1, :], d10w[:, c1:, :]   # [upsampled | enc0]
    ow_a, ow_b = ow[:, :co, :], ow[:, co:, :]         # [decoder out | input skip]

    operands = [
        x2d,
        s0n, s0p, s1n, s1p, s2n, s2p,
        p0e, p0o, p1e, p1o,
        u2, u1,
        _prep_w(e00w), _prep_b(e00b), _prep_w(e01w), _prep_b(e01b),
        _prep_w(e10w), _prep_b(e10b), _prep_w(e11w), _prep_b(e11b),
        _prep_b(bn0g), _prep_b(bn0b), _prep_w(t0w), _prep_b(t0b),
        _prep_b(bn1g), _prep_b(bn1b), _prep_w(t1w), _prep_b(t1b),
        _prep_w(d00wa), _prep_w(d00wb), _prep_b(d00b), _prep_w(d01w), _prep_b(d01b),
        _prep_w(d10wa), _prep_w(d10wb), _prep_b(d10b), _prep_w(d11w), _prep_b(d11b),
        _prep_w(ow_a), _prep_w(ow_b), _prep_b(ob),
    ]

    y2d = pl.pallas_call(
        _unet_kernel,
        out_shape=jax.ShapeDtypeStruct((p["output_channels"], BL0), jnp.float32),
        in_specs=[pl.BlockSpec(memory_space=pltpu.MemorySpace.VMEM)
                  for _ in operands],
        out_specs=pl.BlockSpec(memory_space=pltpu.MemorySpace.VMEM),
    )(*operands)

    # back to PyTorch's (B, C, L) layout
    return jnp.transpose(y2d.reshape(p["output_channels"], B, L), (1, 0, 2))


# ----------------------------------------------------------------------------- NumPy reference
def _ref_forward_np(weights, x, p=PARAMS):
    """Plain NumPy re-implementation of the PyTorch module semantics (training-mode BN)."""
    w = jax.tree_util.tree_map(lambda a: np.asarray(a, np.float32), weights)
    x = np.asarray(x, np.float32)

    def conv(h, wt, bias):
        B, ci, L = h.shape
        co, _, K = wt.shape
        pad = K // 2
        hp = np.zeros((B, ci, L + 2 * pad), np.float32)
        hp[:, :, pad:pad + L] = h
        out = np.zeros((B, co, L), np.float32)
        for k in range(K):
            out += np.einsum("oi,bil->bol", wt[:, :, k], hp[:, :, k:k + L])
        return out + bias.reshape(1, co, 1)

    def relu(h):
        return np.maximum(h, 0.0)

    def maxpool(h, s):
        B, c, L = h.shape
        return h.reshape(B, c, L // s, s).max(-1)

    def upsample(h, s):
        B, c, L = h.shape
        Lo = L * s
        coord = np.maximum((np.arange(Lo) + 0.5) / s - 0.5, 0.0)
        i0 = np.minimum(np.floor(coord).astype(np.int64), L - 1)
        i1 = np.minimum(i0 + 1, L - 1)
        lam = (coord - i0).astype(np.float32)
        return h[:, :, i0] * (1.0 - lam) + h[:, :, i1] * lam

    def bnorm(h, g, b, eps=1e-5):
        mu = h.mean(axis=(0, 2), keepdims=True)
        var = h.var(axis=(0, 2), keepdims=True)
        return (h - mu) / np.sqrt(var + eps) * g.reshape(1, -1, 1) + b.reshape(1, -1, 1)

    x_copy = x
    enc_outs = []
    h = x
    for blk in range(p["no_blocks"]):
        for (cw, cb) in w["enc"][blk]:
            h = relu(conv(h, cw, cb))
        enc_outs.append(h)
        h = maxpool(h, p["enc_pooling_stride"][blk])
    for i in range(p["trans_layers"]):
        g, b = w["trans_bn"][i]
        h = bnorm(h, g, b)
        cw, cb = w["trans"][i]
        h = relu(conv(h, cw, cb))
    for blk in range(p["no_blocks"]):
        h = upsample(h, p["dec_upconv_stride"][blk])
        h = np.concatenate([h, enc_outs[p["no_blocks"] - blk - 1]], axis=1)
        for (cw, cb) in w["dec"][blk]:
            h = relu(conv(h, cw, cb))
    h = np.concatenate([h, x_copy], axis=1)
    cw, cb = w["out"]
    return 1.0 / (1.0 + np.exp(-conv(h, cw, cb)))


# ----------------------------------------------------------------------------- main
if __name__ == "__main__":
    key = jax.random.PRNGKey(0)
    k_w, k_x = jax.random.split(key)

    B, C_in, L = 2, PARAMS["input_features"], 16
    x = jax.random.normal(k_x, (B, C_in, L), jnp.float32)
    weights = init_weights(k_w, PARAMS)

    fwd = jax.jit(unet_forward)
    out = jax.block_until_ready(fwd(weights, x))

    assert out.shape == (B, PARAMS["output_channels"], L), out.shape
    assert bool(jnp.all(jnp.isfinite(out)))

    # cross-check against the NumPy reference of the PyTorch module semantics
    ref = _ref_forward_np(weights, x)
    max_err = float(jnp.max(jnp.abs(out - jnp.asarray(ref))))
    assert max_err < 2e-2, f"mismatch vs reference: max abs err = {max_err}"

    print("KERNEL_OK")
</pallas_src>

<mosaic_0001>
module attributes {stable_mosaic.version = 11 : i64} {
  func.func @_unet_kernel(%arg0: memref<4x32xf32, #tpu.memory_space<vmem>>, %arg1: memref<32x32xf32, #tpu.memory_space<vmem>>, %arg2: memref<32x32xf32, #tpu.memory_space<vmem>>, %arg3: memref<16x16xf32, #tpu.memory_space<vmem>>, %arg4: memref<16x16xf32, #tpu.memory_space<vmem>>, %arg5: memref<8x8xf32, #tpu.memory_space<vmem>>, %arg6: memref<8x8xf32, #tpu.memory_space<vmem>>, %arg7: memref<32x16xf32, #tpu.memory_space<vmem>>, %arg8: memref<32x16xf32, #tpu.memory_space<vmem>>, %arg9: memref<16x8xf32, #tpu.memory_space<vmem>>, %arg10: memref<16x8xf32, #tpu.memory_space<vmem>>, %arg11: memref<8x16xf32, #tpu.memory_space<vmem>>, %arg12: memref<16x32xf32, #tpu.memory_space<vmem>>, %arg13: memref<3x8x4xf32, #tpu.memory_space<vmem>>, %arg14: memref<8x1xf32, #tpu.memory_space<vmem>>, %arg15: memref<3x8x8xf32, #tpu.memory_space<vmem>>, %arg16: memref<8x1xf32, #tpu.memory_space<vmem>>, %arg17: memref<3x16x8xf32, #tpu.memory_space<vmem>>, %arg18: memref<16x1xf32, #tpu.memory_space<vmem>>, %arg19: memref<3x16x16xf32, #tpu.memory_space<vmem>>, %arg20: memref<16x1xf32, #tpu.memory_space<vmem>>, %arg21: memref<16x1xf32, #tpu.memory_space<vmem>>, %arg22: memref<16x1xf32, #tpu.memory_space<vmem>>, %arg23: memref<3x16x16xf32, #tpu.memory_space<vmem>>, %arg24: memref<16x1xf32, #tpu.memory_space<vmem>>, %arg25: memref<16x1xf32, #tpu.memory_space<vmem>>, %arg26: memref<16x1xf32, #tpu.memory_space<vmem>>, %arg27: memref<3x16x16xf32, #tpu.memory_space<vmem>>, %arg28: memref<16x1xf32, #tpu.memory_space<vmem>>, %arg29: memref<3x16x16xf32, #tpu.memory_space<vmem>>, %arg30: memref<3x16x16xf32, #tpu.memory_space<vmem>>, %arg31: memref<16x1xf32, #tpu.memory_space<vmem>>, %arg32: memref<3x16x16xf32, #tpu.memory_space<vmem>>, %arg33: memref<16x1xf32, #tpu.memory_space<vmem>>, %arg34: memref<3x8x16xf32, #tpu.memory_space<vmem>>, %arg35: memref<3x8x8xf32, #tpu.memory_space<vmem>>, %arg36: memref<8x1xf32, #tpu.memory_space<vmem>>, %arg37: memref<3x8x8xf32, #tpu.memory_space<vmem>>, %arg38: memref<8x1xf32, #tpu.memory_space<vmem>>, %arg39: memref<3x2x8xf32, #tpu.memory_space<vmem>>, %arg40: memref<3x2x4xf32, #tpu.memory_space<vmem>>, %arg41: memref<2x1xf32, #tpu.memory_space<vmem>>, %arg42: memref<2x32xf32, #tpu.memory_space<vmem>>) attributes {dimension_semantics = [], scalar_prefetch = 0 : i64, scratch_operands = 0 : i64, tpu.core_type = #tpu.core_type<tc>} {
    %c0 = arith.constant 0 : index
    %c0_0 = arith.constant 0 : index
    %0 = vector.load %arg1[%c0, %c0_0] : memref<32x32xf32, #tpu.memory_space<vmem>>, vector<32x32xf32>
    %c0_1 = arith.constant 0 : index
    %c0_2 = arith.constant 0 : index
    %1 = vector.load %arg2[%c0_1, %c0_2] : memref<32x32xf32, #tpu.memory_space<vmem>>, vector<32x32xf32>
    %c0_3 = arith.constant 0 : index
    %c0_4 = arith.constant 0 : index
    %2 = vector.load %arg3[%c0_3, %c0_4] : memref<16x16xf32, #tpu.memory_space<vmem>>, vector<16x16xf32>
    %c0_5 = arith.constant 0 : index
    %c0_6 = arith.constant 0 : index
    %3 = vector.load %arg4[%c0_5, %c0_6] : memref<16x16xf32, #tpu.memory_space<vmem>>, vector<16x16xf32>
    %c0_7 = arith.constant 0 : index
    %c0_8 = arith.constant 0 : index
    %4 = vector.load %arg5[%c0_7, %c0_8] : memref<8x8xf32, #tpu.memory_space<vmem>>, vector<8x8xf32>
    %c0_9 = arith.constant 0 : index
    %c0_10 = arith.constant 0 : index
    %5 = vector.load %arg6[%c0_9, %c0_10] : memref<8x8xf32, #tpu.memory_space<vmem>>, vector<8x8xf32>
    %c0_11 = arith.constant 0 : index
    %c0_12 = arith.constant 0 : index
    %6 = vector.load %arg7[%c0_11, %c0_12] : memref<32x16xf32, #tpu.memory_space<vmem>>, vector<32x16xf32>
    %c0_13 = arith.constant 0 : index
    %c0_14 = arith.constant 0 : index
    %7 = vector.load %arg8[%c0_13, %c0_14] : memref<32x16xf32, #tpu.memory_space<vmem>>, vector<32x16xf32>
    %c0_15 = arith.constant 0 : index
    %c0_16 = arith.constant 0 : index
    %8 = vector.load %arg9[%c0_15, %c0_16] : memref<16x8xf32, #tpu.memory_space<vmem>>, vector<16x8xf32>
    %c0_17 = arith.constant 0 : index
    %c0_18 = arith.constant 0 : index
    %9 = vector.load %arg10[%c0_17, %c0_18] : memref<16x8xf32, #tpu.memory_space<vmem>>, vector<16x8xf32>
    %c0_19 = arith.constant 0 : index
    %c0_20 = arith.constant 0 : index
    %10 = vector.load %arg11[%c0_19, %c0_20] : memref<8x16xf32, #tpu.memory_space<vmem>>, vector<8x16xf32>
    %c0_21 = arith.constant 0 : index
    %c0_22 = arith.constant 0 : index
    %11 = vector.load %arg12[%c0_21, %c0_22] : memref<16x32xf32, #tpu.memory_space<vmem>>, vector<16x32xf32>
    %c0_23 = arith.constant 0 : index
    %c0_24 = arith.constant 0 : index
    %12 = vector.load %arg0[%c0_23, %c0_24] : memref<4x32xf32, #tpu.memory_space<vmem>>, vector<4x32xf32>
    %cst = arith.constant 0.000000e+00 : f32
    %13 = vector.broadcast %cst : f32 to vector<8x32xf32>
    %cst_25 = arith.constant dense<0.000000e+00> : vector<4x32xf32>
    %14 = tpu.matmul %12, %0, %cst_25 {dimension_numbers = #tpu.dot_dimension_numbers<[1], [0], [0], [1], [0, 0, 1, 1], [], []>} : vector<4x32xf32>, vector<32x32xf32>, vector<4x32xf32> -> vector<4x32xf32>
    %c0_26 = arith.constant 0 : index
    %c0_27 = arith.constant 0 : index
    %c0_28 = arith.constant 0 : index
    %15 = vector.load %arg13[%c0_26, %c0_27, %c0_28] : memref<3x8x4xf32, #tpu.memory_space<vmem>>, vector<1x8x4xf32>
    %16 = vector.shape_cast %15 : vector<1x8x4xf32> to vector<8x4xf32>
    %cst_29 = arith.constant dense<0.000000e+00> : vector<8x32xf32>
    %17 = tpu.matmul %16, %14, %cst_29 {dimension_numbers = #tpu.dot_dimension_numbers<[1], [0], [0], [1], [0, 0, 1, 1], [], []>} : vector<8x4xf32>, vector<4x32xf32>, vector<8x32xf32> -> vector<8x32xf32>
    %18 = arith.addf %13, %17 : vector<8x32xf32>
    %c1 = arith.constant 1 : index
    %c0_30 = arith.constant 0 : index
    %c0_31 = arith.constant 0 : index
    %19 = vector.load %arg13[%c1, %c0_30, %c0_31] : memref<3x8x4xf32, #tpu.memory_space<vmem>>, vector<1x8x4xf32>
    %20 = vector.shape_cast %19 : vector<1x8x4xf32> to vector<8x4xf32>
    %cst_32 = arith.constant dense<0.000000e+00> : vector<8x32xf32>
    %21 = tpu.matmul %20, %12, %cst_32 {dimension_numbers = #tpu.dot_dimension_numbers<[1], [0], [0], [1], [0, 0, 1, 1], [], []>} : vector<8x4xf32>, vector<4x32xf32>, vector<8x32xf32> -> vector<8x32xf32>
    %22 = arith.addf %18, %21 : vector<8x32xf32>
    %cst_33 = arith.constant dense<0.000000e+00> : vector<4x32xf32>
    %23 = tpu.matmul %12, %1, %cst_33 {dimension_numbers = #tpu.dot_dimension_numbers<[1], [0], [0], [1], [0, 0, 1, 1], [], []>} : vector<4x32xf32>, vector<32x32xf32>, vector<4x32xf32> -> vector<4x32xf32>
    %c2 = arith.constant 2 : index
    %c0_34 = arith.constant 0 : index
    %c0_35 = arith.constant 0 : index
    %24 = vector.load %arg13[%c2, %c0_34, %c0_35] : memref<3x8x4xf32, #tpu.memory_space<vmem>>, vector<1x8x4xf32>
    %25 = vector.shape_cast %24 : vector<1x8x4xf32> to vector<8x4xf32>
    %cst_36 = arith.constant dense<0.000000e+00> : vector<8x32xf32>
    %26 = tpu.matmul %25, %23, %cst_36 {dimension_numbers = #tpu.dot_dimension_numbers<[1], [0], [0], [1], [0, 0, 1, 1], [], []>} : vector<8x4xf32>, vector<4x32xf32>, vector<8x32xf32> -> vector<8x32xf32>
    %27 = arith.addf %22, %26 : vector<8x32xf32>
    %c0_37 = arith.constant 0 : index
    %c0_38 = arith.constant 0 : index
    %28 = vector.load %arg14[%c0_37, %c0_38] : memref<8x1xf32, #tpu.memory_space<vmem>>, vector<8x1xf32>
    %29 = vector.broadcast %28 : vector<8x1xf32> to vector<8x32xf32>
    %30 = arith.addf %27, %29 : vector<8x32xf32>
    %cst_39 = arith.constant 0.000000e+00 : f32
    %31 = vector.broadcast %cst_39 : f32 to vector<8x32xf32>
    %32 = arith.maximumf %30, %31 : vector<8x32xf32>
    %cst_40 = arith.constant 0.000000e+00 : f32
    %33 = vector.broadcast %cst_40 : f32 to vector<8x32xf32>
    %cst_41 = arith.constant dense<0.000000e+00> : vector<8x32xf32>
    %34 = tpu.matmul %32, %0, %cst_41 {dimension_numbers = #tpu.dot_dimension_numbers<[1], [0], [0], [1], [0, 0, 1, 1], [], []>} : vector<8x32xf32>, vector<32x32xf32>, vector<8x32xf32> -> vector<8x32xf32>
    %c0_42 = arith.constant 0 : index
    %c0_43 = arith.constant 0 : index
    %c0_44 = arith.constant 0 : index
    %35 = vector.load %arg15[%c0_42, %c0_43, %c0_44] : memref<3x8x8xf32, #tpu.memory_space<vmem>>, vector<1x8x8xf32>
    %36 = vector.shape_cast %35 : vector<1x8x8xf32> to vector<8x8xf32>
    %cst_45 = arith.constant dense<0.000000e+00> : vector<8x32xf32>
    %37 = tpu.matmul %36, %34, %cst_45 {dimension_numbers = #tpu.dot_dimension_numbers<[1], [0], [0], [1], [0, 0, 1, 1], [], []>} : vector<8x8xf32>, vector<8x32xf32>, vector<8x32xf32> -> vector<8x32xf32>
    %38 = arith.addf %33, %37 : vector<8x32xf32>
    %c1_46 = arith.constant 1 : index
    %c0_47 = arith.constant 0 : index
    %c0_48 = arith.constant 0 : index
    %39 = vector.load %arg15[%c1_46, %c0_47, %c0_48] : memref<3x8x8xf32, #tpu.memory_space<vmem>>, vector<1x8x8xf32>
    %40 = vector.shape_cast %39 : vector<1x8x8xf32> to vector<8x8xf32>
    %cst_49 = arith.constant dense<0.000000e+00> : vector<8x32xf32>
    %41 = tpu.matmul %40, %32, %cst_49 {dimension_numbers = #tpu.dot_dimension_numbers<[1], [0], [0], [1], [0, 0, 1, 1], [], []>} : vector<8x8xf32>, vector<8x32xf32>, vector<8x32xf32> -> vector<8x32xf32>
    %42 = arith.addf %38, %41 : vector<8x32xf32>
    %cst_50 = arith.constant dense<0.000000e+00> : vector<8x32xf32>
    %43 = tpu.matmul %32, %1, %cst_50 {dimension_numbers = #tpu.dot_dimension_numbers<[1], [0], [0], [1], [0, 0, 1, 1], [], []>} : vector<8x32xf32>, vector<32x32xf32>, vector<8x32xf32> -> vector<8x32xf32>
    %c2_51 = arith.constant 2 : index
    %c0_52 = arith.constant 0 : index
    %c0_53 = arith.constant 0 : index
    %44 = vector.load %arg15[%c2_51, %c0_52, %c0_53] : memref<3x8x8xf32, #tpu.memory_space<vmem>>, vector<1x8x8xf32>
    %45 = vector.shape_cast %44 : vector<1x8x8xf32> to vector<8x8xf32>
    %cst_54 = arith.constant dense<0.000000e+00> : vector<8x32xf32>
    %46 = tpu.matmul %45, %43, %cst_54 {dimension_numbers = #tpu.dot_dimension_numbers<[1], [0], [0], [1], [0, 0, 1, 1], [], []>} : vector<8x8xf32>, vector<8x32xf32>, vector<8x32xf32> -> vector<8x32xf32>
    %47 = arith.addf %42, %46 : vector<8x32xf32>
    %c0_55 = arith.constant 0 : index
    %c0_56 = arith.constant 0 : index
    %48 = vector.load %arg16[%c0_55, %c0_56] : memref<8x1xf32, #tpu.memory_space<vmem>>, vector<8x1xf32>
    %49 = vector.broadcast %48 : vector<8x1xf32> to vector<8x32xf32>
    %50 = arith.addf %47, %49 : vector<8x32xf32>
    %cst_57 = arith.constant 0.000000e+00 : f32
    %51 = vector.broadcast %cst_57 : f32 to vector<8x32xf32>
    %52 = arith.maximumf %50, %51 : vector<8x32xf32>
    %cst_58 = arith.constant dense<0.000000e+00> : vector<8x16xf32>
    %53 = tpu.matmul %52, %6, %cst_58 {dimension_numbers = #tpu.dot_dimension_numbers<[1], [0], [0], [1], [0, 0, 1, 1], [], []>} : vector<8x32xf32>, vector<32x16xf32>, vector<8x16xf32> -> vector<8x16xf32>
    %cst_59 = arith.constant dense<0.000000e+00> : vector<8x16xf32>
    %54 = tpu.matmul %52, %7, %cst_59 {dimension_numbers = #tpu.dot_dimension_numbers<[1], [0], [0], [1], [0, 0, 1, 1], [], []>} : vector<8x32xf32>, vector<32x16xf32>, vector<8x16xf32> -> vector<8x16xf32>
    %55 = arith.maximumf %53, %54 : vector<8x16xf32>
    %cst_60 = arith.constant 0.000000e+00 : f32
    %56 = vector.broadcast %cst_60 : f32 to vector<16x16xf32>
    %cst_61 = arith.constant dense<0.000000e+00> : vector<8x16xf32>
    %57 = tpu.matmul %55, %2, %cst_61 {dimension_numbers = #tpu.dot_dimension_numbers<[1], [0], [0], [1], [0, 0, 1, 1], [], []>} : vector<8x16xf32>, vector<16x16xf32>, vector<8x16xf32> -> vector<8x16xf32>
    %c0_62 = arith.constant 0 : index
    %c0_63 = arith.constant 0 : index
    %c0_64 = arith.constant 0 : index
    %58 = vector.load %arg17[%c0_62, %c0_63, %c0_64] : memref<3x16x8xf32, #tpu.memory_space<vmem>>, vector<1x16x8xf32>
    %59 = vector.shape_cast %58 : vector<1x16x8xf32> to vector<16x8xf32>
    %cst_65 = arith.constant dense<0.000000e+00> : vector<16x16xf32>
    %60 = tpu.matmul %59, %57, %cst_65 {dimension_numbers = #tpu.dot_dimension_numbers<[1], [0], [0], [1], [0, 0, 1, 1], [], []>} : vector<16x8xf32>, vector<8x16xf32>, vector<16x16xf32> -> vector<16x16xf32>
    %61 = arith.addf %56, %60 : vector<16x16xf32>
    %c1_66 = arith.constant 1 : index
    %c0_67 = arith.constant 0 : index
    %c0_68 = arith.constant 0 : index
    %62 = vector.load %arg17[%c1_66, %c0_67, %c0_68] : memref<3x16x8xf32, #tpu.memory_space<vmem>>, vector<1x16x8xf32>
    %63 = vector.shape_cast %62 : vector<1x16x8xf32> to vector<16x8xf32>
    %cst_69 = arith.constant dense<0.000000e+00> : vector<16x16xf32>
    %64 = tpu.matmul %63, %55, %cst_69 {dimension_numbers = #tpu.dot_dimension_numbers<[1], [0], [0], [1], [0, 0, 1, 1], [], []>} : vector<16x8xf32>, vector<8x16xf32>, vector<16x16xf32> -> vector<16x16xf32>
    %65 = arith.addf %61, %64 : vector<16x16xf32>
    %cst_70 = arith.constant dense<0.000000e+00> : vector<8x16xf32>
    %66 = tpu.matmul %55, %3, %cst_70 {dimension_numbers = #tpu.dot_dimension_numbers<[1], [0], [0], [1], [0, 0, 1, 1], [], []>} : vector<8x16xf32>, vector<16x16xf32>, vector<8x16xf32> -> vector<8x16xf32>
    %c2_71 = arith.constant 2 : index
    %c0_72 = arith.constant 0 : index
    %c0_73 = arith.constant 0 : index
    %67 = vector.load %arg17[%c2_71, %c0_72, %c0_73] : memref<3x16x8xf32, #tpu.memory_space<vmem>>, vector<1x16x8xf32>
    %68 = vector.shape_cast %67 : vector<1x16x8xf32> to vector<16x8xf32>
    %cst_74 = arith.constant dense<0.000000e+00> : vector<16x16xf32>
    %69 = tpu.matmul %68, %66, %cst_74 {dimension_numbers = #tpu.dot_dimension_numbers<[1], [0], [0], [1], [0, 0, 1, 1], [], []>} : vector<16x8xf32>, vector<8x16xf32>, vector<16x16xf32> -> vector<16x16xf32>
    %70 = arith.addf %65, %69 : vector<16x16xf32>
    %c0_75 = arith.constant 0 : index
    %c0_76 = arith.constant 0 : index
    %71 = vector.load %arg18[%c0_75, %c0_76] : memref<16x1xf32, #tpu.memory_space<vmem>>, vector<16x1xf32>
    %72 = vector.broadcast %71 : vector<16x1xf32> to vector<16x16xf32>
    %73 = arith.addf %70, %72 : vector<16x16xf32>
    %cst_77 = arith.constant 0.000000e+00 : f32
    %74 = vector.broadcast %cst_77 : f32 to vector<16x16xf32>
    %75 = arith.maximumf %73, %74 : vector<16x16xf32>
    %cst_78 = arith.constant 0.000000e+00 : f32
    %76 = vector.broadcast %cst_78 : f32 to vector<16x16xf32>
    %cst_79 = arith.constant dense<0.000000e+00> : vector<16x16xf32>
    %77 = tpu.matmul %75, %2, %cst_79 {dimension_numbers = #tpu.dot_dimension_numbers<[1], [0], [0], [1], [0, 0, 1, 1], [], []>} : vector<16x16xf32>, vector<16x16xf32>, vector<16x16xf32> -> vector<16x16xf32>
    %c0_80 = arith.constant 0 : index
    %c0_81 = arith.constant 0 : index
    %c0_82 = arith.constant 0 : index
    %78 = vector.load %arg19[%c0_80, %c0_81, %c0_82] : memref<3x16x16xf32, #tpu.memory_space<vmem>>, vector<1x16x16xf32>
    %79 = vector.shape_cast %78 : vector<1x16x16xf32> to vector<16x16xf32>
    %cst_83 = arith.constant dense<0.000000e+00> : vector<16x16xf32>
    %80 = tpu.matmul %79, %77, %cst_83 {dimension_numbers = #tpu.dot_dimension_numbers<[1], [0], [0], [1], [0, 0, 1, 1], [], []>} : vector<16x16xf32>, vector<16x16xf32>, vector<16x16xf32> -> vector<16x16xf32>
    %81 = arith.addf %76, %80 : vector<16x16xf32>
    %c1_84 = arith.constant 1 : index
    %c0_85 = arith.constant 0 : index
    %c0_86 = arith.constant 0 : index
    %82 = vector.load %arg19[%c1_84, %c0_85, %c0_86] : memref<3x16x16xf32, #tpu.memory_space<vmem>>, vector<1x16x16xf32>
    %83 = vector.shape_cast %82 : vector<1x16x16xf32> to vector<16x16xf32>
    %cst_87 = arith.constant dense<0.000000e+00> : vector<16x16xf32>
    %84 = tpu.matmul %83, %75, %cst_87 {dimension_numbers = #tpu.dot_dimension_numbers<[1], [0], [0], [1], [0, 0, 1, 1], [], []>} : vector<16x16xf32>, vector<16x16xf32>, vector<16x16xf32> -> vector<16x16xf32>
    %85 = arith.addf %81, %84 : vector<16x16xf32>
    %cst_88 = arith.constant dense<0.000000e+00> : vector<16x16xf32>
    %86 = tpu.matmul %75, %3, %cst_88 {dimension_numbers = #tpu.dot_dimension_numbers<[1], [0], [0], [1], [0, 0, 1, 1], [], []>} : vector<16x16xf32>, vector<16x16xf32>, vector<16x16xf32> -> vector<16x16xf32>
    %c2_89 = arith.constant 2 : index
    %c0_90 = arith.constant 0 : index
    %c0_91 = arith.constant 0 : index
    %87 = vector.load %arg19[%c2_89, %c0_90, %c0_91] : memref<3x16x16xf32, #tpu.memory_space<vmem>>, vector<1x16x16xf32>
    %88 = vector.shape_cast %87 : vector<1x16x16xf32> to vector<16x16xf32>
    %cst_92 = arith.constant dense<0.000000e+00> : vector<16x16xf32>
    %89 = tpu.matmul %88, %86, %cst_92 {dimension_numbers = #tpu.dot_dimension_numbers<[1], [0], [0], [1], [0, 0, 1, 1], [], []>} : vector<16x16xf32>, vector<16x16xf32>, vector<16x16xf32> -> vector<16x16xf32>
    %90 = arith.addf %85, %89 : vector<16x16xf32>
    %c0_93 = arith.constant 0 : index
    %c0_94 = arith.constant 0 : index
    %91 = vector.load %arg20[%c0_93, %c0_94] : memref<16x1xf32, #tpu.memory_space<vmem>>, vector<16x1xf32>
    %92 = vector.broadcast %91 : vector<16x1xf32> to vector<16x16xf32>
    %93 = arith.addf %90, %92 : vector<16x16xf32>
    %cst_95 = arith.constant 0.000000e+00 : f32
    %94 = vector.broadcast %cst_95 : f32 to vector<16x16xf32>
    %95 = arith.maximumf %93, %94 : vector<16x16xf32>
    %cst_96 = arith.constant dense<0.000000e+00> : vector<16x8xf32>
    %96 = tpu.matmul %95, %8, %cst_96 {dimension_numbers = #tpu.dot_dimension_numbers<[1], [0], [0], [1], [0, 0, 1, 1], [], []>} : vector<16x16xf32>, vector<16x8xf32>, vector<16x8xf32> -> vector<16x8xf32>
    %cst_97 = arith.constant dense<0.000000e+00> : vector<16x8xf32>
    %97 = tpu.matmul %95, %9, %cst_97 {dimension_numbers = #tpu.dot_dimension_numbers<[1], [0], [0], [1], [0, 0, 1, 1], [], []>} : vector<16x16xf32>, vector<16x8xf32>, vector<16x8xf32> -> vector<16x8xf32>
    %98 = arith.maximumf %96, %97 : vector<16x8xf32>
    %cst_98 = arith.constant dense<0.000000e+00> : vector<16xf32>
    %99 = vector.multi_reduction <add>, %98, %cst_98 [1] : vector<16x8xf32> to vector<16xf32>
    %100 = vector.shape_cast %99 : vector<16xf32> to vector<16x1xf32>
    %cst_99 = arith.constant 8.000000e+00 : f32
    %101 = vector.broadcast %cst_99 : f32 to vector<16x1xf32>
    %102 = arith.divf %100, %101 : vector<16x1xf32>
    %103 = vector.broadcast %102 : vector<16x1xf32> to vector<16x8xf32>
    %104 = arith.subf %98, %103 : vector<16x8xf32>
    %105 = arith.mulf %104, %104 : vector<16x8xf32>
    %cst_100 = arith.constant dense<0.000000e+00> : vector<16xf32>
    %106 = vector.multi_reduction <add>, %105, %cst_100 [1] : vector<16x8xf32> to vector<16xf32>
    %107 = vector.shape_cast %106 : vector<16xf32> to vector<16x1xf32>
    %cst_101 = arith.constant 8.000000e+00 : f32
    %108 = vector.broadcast %cst_101 : f32 to vector<16x1xf32>
    %109 = arith.divf %107, %108 : vector<16x1xf32>
    %cst_102 = arith.constant 9.99999974E-6 : f32
    %110 = vector.broadcast %cst_102 : f32 to vector<16x1xf32>
    %111 = arith.addf %109, %110 : vector<16x1xf32>
    %112 = math.rsqrt %111 : vector<16x1xf32>
    %113 = vector.broadcast %112 : vector<16x1xf32> to vector<16x8xf32>
    %114 = arith.mulf %104, %113 : vector<16x8xf32>
    %c0_103 = arith.constant 0 : index
    %c0_104 = arith.constant 0 : index
    %115 = vector.load %arg21[%c0_103, %c0_104] : memref<16x1xf32, #tpu.memory_space<vmem>>, vector<16x1xf32>
    %116 = vector.broadcast %115 : vector<16x1xf32> to vector<16x8xf32>
    %117 = arith.mulf %114, %116 : vector<16x8xf32>
    %c0_105 = arith.constant 0 : index
    %c0_106 = arith.constant 0 : index
    %118 = vector.load %arg22[%c0_105, %c0_106] : memref<16x1xf32, #tpu.memory_space<vmem>>, vector<16x1xf32>
    %119 = vector.broadcast %118 : vector<16x1xf32> to vector<16x8xf32>
    %120 = arith.addf %117, %119 : vector<16x8xf32>
    %cst_107 = arith.constant 0.000000e+00 : f32
    %121 = vector.broadcast %cst_107 : f32 to vector<16x8xf32>
    %cst_108 = arith.constant dense<0.000000e+00> : vector<16x8xf32>
    %122 = tpu.matmul %120, %4, %cst_108 {dimension_numbers = #tpu.dot_dimension_numbers<[1], [0], [0], [1], [0, 0, 1, 1], [], []>} : vector<16x8xf32>, vector<8x8xf32>, vector<16x8xf32> -> vector<16x8xf32>
    %c0_109 = arith.constant 0 : index
    %c0_110 = arith.constant 0 : index
    %c0_111 = arith.constant 0 : index
    %123 = vector.load %arg23[%c0_109, %c0_110, %c0_111] : memref<3x16x16xf32, #tpu.memory_space<vmem>>, vector<1x16x16xf32>
    %124 = vector.shape_cast %123 : vector<1x16x16xf32> to vector<16x16xf32>
    %cst_112 = arith.constant dense<0.000000e+00> : vector<16x8xf32>
    %125 = tpu.matmul %124, %122, %cst_112 {dimension_numbers = #tpu.dot_dimension_numbers<[1], [0], [0], [1], [0, 0, 1, 1], [], []>} : vector<16x16xf32>, vector<16x8xf32>, vector<16x8xf32> -> vector<16x8xf32>
    %126 = arith.addf %121, %125 : vector<16x8xf32>
    %c1_113 = arith.constant 1 : index
    %c0_114 = arith.constant 0 : index
    %c0_115 = arith.constant 0 : index
    %127 = vector.load %arg23[%c1_113, %c0_114, %c0_115] : memref<3x16x16xf32, #tpu.memory_space<vmem>>, vector<1x16x16xf32>
    %128 = vector.shape_cast %127 : vector<1x16x16xf32> to vector<16x16xf32>
    %cst_116 = arith.constant dense<0.000000e+00> : vector<16x8xf32>
    %129 = tpu.matmul %128, %120, %cst_116 {dimension_numbers = #tpu.dot_dimension_numbers<[1], [0], [0], [1], [0, 0, 1, 1], [], []>} : vector<16x16xf32>, vector<16x8xf32>, vector<16x8xf32> -> vector<16x8xf32>
    %130 = arith.addf %126, %129 : vector<16x8xf32>
    %cst_117 = arith.constant dense<0.000000e+00> : vector<16x8xf32>
    %131 = tpu.matmul %120, %5, %cst_117 {dimension_numbers = #tpu.dot_dimension_numbers<[1], [0], [0], [1], [0, 0, 1, 1], [], []>} : vector<16x8xf32>, vector<8x8xf32>, vector<16x8xf32> -> vector<16x8xf32>
    %c2_118 = arith.constant 2 : index
    %c0_119 = arith.constant 0 : index
    %c0_120 = arith.constant 0 : index
    %132 = vector.load %arg23[%c2_118, %c0_119, %c0_120] : memref<3x16x16xf32, #tpu.memory_space<vmem>>, vector<1x16x16xf32>
    %133 = vector.shape_cast %132 : vector<1x16x16xf32> to vector<16x16xf32>
    %cst_121 = arith.constant dense<0.000000e+00> : vector<16x8xf32>
    %134 = tpu.matmul %133, %131, %cst_121 {dimension_numbers = #tpu.dot_dimension_numbers<[1], [0], [0], [1], [0, 0, 1, 1], [], []>} : vector<16x16xf32>, vector<16x8xf32>, vector<16x8xf32> -> vector<16x8xf32>
    %135 = arith.addf %130, %134 : vector<16x8xf32>
    %c0_122 = arith.constant 0 : index
    %c0_123 = arith.constant 0 : index
    %136 = vector.load %arg24[%c0_122, %c0_123] : memref<16x1xf32, #tpu.memory_space<vmem>>, vector<16x1xf32>
    %137 = vector.broadcast %136 : vector<16x1xf32> to vector<16x8xf32>
    %138 = arith.addf %135, %137 : vector<16x8xf32>
    %cst_124 = arith.constant 0.000000e+00 : f32
    %139 = vector.broadcast %cst_124 : f32 to vector<16x8xf32>
    %140 = arith.maximumf %138, %139 : vector<16x8xf32>
    %cst_125 = arith.constant dense<0.000000e+00> : vector<16xf32>
    %141 = vector.multi_reduction <add>, %140, %cst_125 [1] : vector<16x8xf32> to vector<16xf32>
    %142 = vector.shape_cast %141 : vector<16xf32> to vector<16x1xf32>
    %cst_126 = arith.constant 8.000000e+00 : f32
    %143 = vector.broadcast %cst_126 : f32 to vector<16x1xf32>
    %144 = arith.divf %142, %143 : vector<16x1xf32>
    %145 = vector.broadcast %144 : vector<16x1xf32> to vector<16x8xf32>
    %146 = arith.subf %140, %145 : vector<16x8xf32>
    %147 = arith.mulf %146, %146 : vector<16x8xf32>
    %cst_127 = arith.constant dense<0.000000e+00> : vector<16xf32>
    %148 = vector.multi_reduction <add>, %147, %cst_127 [1] : vector<16x8xf32> to vector<16xf32>
    %149 = vector.shape_cast %148 : vector<16xf32> to vector<16x1xf32>
    %cst_128 = arith.constant 8.000000e+00 : f32
    %150 = vector.broadcast %cst_128 : f32 to vector<16x1xf32>
    %151 = arith.divf %149, %150 : vector<16x1xf32>
    %cst_129 = arith.constant 9.99999974E-6 : f32
    %152 = vector.broadcast %cst_129 : f32 to vector<16x1xf32>
    %153 = arith.addf %151, %152 : vector<16x1xf32>
    %154 = math.rsqrt %153 : vector<16x1xf32>
    %155 = vector.broadcast %154 : vector<16x1xf32> to vector<16x8xf32>
    %156 = arith.mulf %146, %155 : vector<16x8xf32>
    %c0_130 = arith.constant 0 : index
    %c0_131 = arith.constant 0 : index
    %157 = vector.load %arg25[%c0_130, %c0_131] : memref<16x1xf32, #tpu.memory_space<vmem>>, vector<16x1xf32>
    %158 = vector.broadcast %157 : vector<16x1xf32> to vector<16x8xf32>
    %159 = arith.mulf %156, %158 : vector<16x8xf32>
    %c0_132 = arith.constant 0 : index
    %c0_133 = arith.constant 0 : index
    %160 = vector.load %arg26[%c0_132, %c0_133] : memref<16x1xf32, #tpu.memory_space<vmem>>, vector<16x1xf32>
    %161 = vector.broadcast %160 : vector<16x1xf32> to vector<16x8xf32>
    %162 = arith.addf %159, %161 : vector<16x8xf32>
    %cst_134 = arith.constant 0.000000e+00 : f32
    %163 = vector.broadcast %cst_134 : f32 to vector<16x8xf32>
    %cst_135 = arith.constant dense<0.000000e+00> : vector<16x8xf32>
    %164 = tpu.matmul %162, %4, %cst_135 {dimension_numbers = #tpu.dot_dimension_numbers<[1], [0], [0], [1], [0, 0, 1, 1], [], []>} : vector<16x8xf32>, vector<8x8xf32>, vector<16x8xf32> -> vector<16x8xf32>
    %c0_136 = arith.constant 0 : index
    %c0_137 = arith.constant 0 : index
    %c0_138 = arith.constant 0 : index
    %165 = vector.load %arg27[%c0_136, %c0_137, %c0_138] : memref<3x16x16xf32, #tpu.memory_space<vmem>>, vector<1x16x16xf32>
    %166 = vector.shape_cast %165 : vector<1x16x16xf32> to vector<16x16xf32>
    %cst_139 = arith.constant dense<0.000000e+00> : vector<16x8xf32>
    %167 = tpu.matmul %166, %164, %cst_139 {dimension_numbers = #tpu.dot_dimension_numbers<[1], [0], [0], [1], [0, 0, 1, 1], [], []>} : vector<16x16xf32>, vector<16x8xf32>, vector<16x8xf32> -> vector<16x8xf32>
    %168 = arith.addf %163, %167 : vector<16x8xf32>
    %c1_140 = arith.constant 1 : index
    %c0_141 = arith.constant 0 : index
    %c0_142 = arith.constant 0 : index
    %169 = vector.load %arg27[%c1_140, %c0_141, %c0_142] : memref<3x16x16xf32, #tpu.memory_space<vmem>>, vector<1x16x16xf32>
    %170 = vector.shape_cast %169 : vector<1x16x16xf32> to vector<16x16xf32>
    %cst_143 = arith.constant dense<0.000000e+00> : vector<16x8xf32>
    %171 = tpu.matmul %170, %162, %cst_143 {dimension_numbers = #tpu.dot_dimension_numbers<[1], [0], [0], [1], [0, 0, 1, 1], [], []>} : vector<16x16xf32>, vector<16x8xf32>, vector<16x8xf32> -> vector<16x8xf32>
    %172 = arith.addf %168, %171 : vector<16x8xf32>
    %cst_144 = arith.constant dense<0.000000e+00> : vector<16x8xf32>
    %173 = tpu.matmul %162, %5, %cst_144 {dimension_numbers = #tpu.dot_dimension_numbers<[1], [0], [0], [1], [0, 0, 1, 1], [], []>} : vector<16x8xf32>, vector<8x8xf32>, vector<16x8xf32> -> vector<16x8xf32>
    %c2_145 = arith.constant 2 : index
    %c0_146 = arith.constant 0 : index
    %c0_147 = arith.constant 0 : index
    %174 = vector.load %arg27[%c2_145, %c0_146, %c0_147] : memref<3x16x16xf32, #tpu.memory_space<vmem>>, vector<1x16x16xf32>
    %175 = vector.shape_cast %174 : vector<1x16x16xf32> to vector<16x16xf32>
    %cst_148 = arith.constant dense<0.000000e+00> : vector<16x8xf32>
    %176 = tpu.matmul %175, %173, %cst_148 {dimension_numbers = #tpu.dot_dimension_numbers<[1], [0], [0], [1], [0, 0, 1, 1], [], []>} : vector<16x16xf32>, vector<16x8xf32>, vector<16x8xf32> -> vector<16x8xf32>
    %177 = arith.addf %172, %176 : vector<16x8xf32>
    %c0_149 = arith.constant 0 : index
    %c0_150 = arith.constant 0 : index
    %178 = vector.load %arg28[%c0_149, %c0_150] : memref<16x1xf32, #tpu.memory_space<vmem>>, vector<16x1xf32>
    %179 = vector.broadcast %178 : vector<16x1xf32> to vector<16x8xf32>
    %180 = arith.addf %177, %179 : vector<16x8xf32>
    %cst_151 = arith.constant 0.000000e+00 : f32
    %181 = vector.broadcast %cst_151 : f32 to vector<16x8xf32>
    %182 = arith.maximumf %180, %181 : vector<16x8xf32>
    %cst_152 = arith.constant dense<0.000000e+00> : vector<16x16xf32>
    %183 = tpu.matmul %182, %10, %cst_152 {dimension_numbers = #tpu.dot_dimension_numbers<[1], [0], [0], [1], [0, 0, 1, 1], [], []>} : vector<16x8xf32>, vector<8x16xf32>, vector<16x16xf32> -> vector<16x16xf32>
    %cst_153 = arith.constant 0.000000e+00 : f32
    %184 = vector.broadcast %cst_153 : f32 to vector<16x16xf32>
    %cst_154 = arith.constant dense<0.000000e+00> : vector<16x16xf32>
    %185 = tpu.matmul %183, %2, %cst_154 {dimension_numbers = #tpu.dot_dimension_numbers<[1], [0], [0], [1], [0, 0, 1, 1], [], []>} : vector<16x16xf32>, vector<16x16xf32>, vector<16x16xf32> -> vector<16x16xf32>
    %c0_155 = arith.constant 0 : index
    %c0_156 = arith.constant 0 : index
    %c0_157 = arith.constant 0 : index
    %186 = vector.load %arg29[%c0_155, %c0_156, %c0_157] : memref<3x16x16xf32, #tpu.memory_space<vmem>>, vector<1x16x16xf32>
    %187 = vector.shape_cast %186 : vector<1x16x16xf32> to vector<16x16xf32>
    %cst_158 = arith.constant dense<0.000000e+00> : vector<16x16xf32>
    %188 = tpu.matmul %187, %185, %cst_158 {dimension_numbers = #tpu.dot_dimension_numbers<[1], [0], [0], [1], [0, 0, 1, 1], [], []>} : vector<16x16xf32>, vector<16x16xf32>, vector<16x16xf32> -> vector<16x16xf32>
    %189 = arith.addf %184, %188 : vector<16x16xf32>
    %c1_159 = arith.constant 1 : index
    %c0_160 = arith.constant 0 : index
    %c0_161 = arith.constant 0 : index
    %190 = vector.load %arg29[%c1_159, %c0_160, %c0_161] : memref<3x16x16xf32, #tpu.memory_space<vmem>>, vector<1x16x16xf32>
    %191 = vector.shape_cast %190 : vector<1x16x16xf32> to vector<16x16xf32>
    %cst_162 = arith.constant dense<0.000000e+00> : vector<16x16xf32>
    %192 = tpu.matmul %191, %183, %cst_162 {dimension_numbers = #tpu.dot_dimension_numbers<[1], [0], [0], [1], [0, 0, 1, 1], [], []>} : vector<16x16xf32>, vector<16x16xf32>, vector<16x16xf32> -> vector<16x16xf32>
    %193 = arith.addf %189, %192 : vector<16x16xf32>
    %cst_163 = arith.constant dense<0.000000e+00> : vector<16x16xf32>
    %194 = tpu.matmul %183, %3, %cst_163 {dimension_numbers = #tpu.dot_dimension_numbers<[1], [0], [0], [1], [0, 0, 1, 1], [], []>} : vector<16x16xf32>, vector<16x16xf32>, vector<16x16xf32> -> vector<16x16xf32>
    %c2_164 = arith.constant 2 : index
    %c0_165 = arith.constant 0 : index
    %c0_166 = arith.constant 0 : index
    %195 = vector.load %arg29[%c2_164, %c0_165, %c0_166] : memref<3x16x16xf32, #tpu.memory_space<vmem>>, vector<1x16x16xf32>
    %196 = vector.shape_cast %195 : vector<1x16x16xf32> to vector<16x16xf32>
    %cst_167 = arith.constant dense<0.000000e+00> : vector<16x16xf32>
    %197 = tpu.matmul %196, %194, %cst_167 {dimension_numbers = #tpu.dot_dimension_numbers<[1], [0], [0], [1], [0, 0, 1, 1], [], []>} : vector<16x16xf32>, vector<16x16xf32>, vector<16x16xf32> -> vector<16x16xf32>
    %198 = arith.addf %193, %197 : vector<16x16xf32>
    %cst_168 = arith.constant dense<0.000000e+00> : vector<16x16xf32>
    %199 = tpu.matmul %95, %2, %cst_168 {dimension_numbers = #tpu.dot_dimension_numbers<[1], [0], [0], [1], [0, 0, 1, 1], [], []>} : vector<16x16xf32>, vector<16x16xf32>, vector<16x16xf32> -> vector<16x16xf32>
    %c0_169 = arith.constant 0 : index
    %c0_170 = arith.constant 0 : index
    %c0_171 = arith.constant 0 : index
    %200 = vector.load %arg30[%c0_169, %c0_170, %c0_171] : memref<3x16x16xf32, #tpu.memory_space<vmem>>, vector<1x16x16xf32>
    %201 = vector.shape_cast %200 : vector<1x16x16xf32> to vector<16x16xf32>
    %cst_172 = arith.constant dense<0.000000e+00> : vector<16x16xf32>
    %202 = tpu.matmul %201, %199, %cst_172 {dimension_numbers = #tpu.dot_dimension_numbers<[1], [0], [0], [1], [0, 0, 1, 1], [], []>} : vector<16x16xf32>, vector<16x16xf32>, vector<16x16xf32> -> vector<16x16xf32>
    %203 = arith.addf %198, %202 : vector<16x16xf32>
    %c1_173 = arith.constant 1 : index
    %c0_174 = arith.constant 0 : index
    %c0_175 = arith.constant 0 : index
    %204 = vector.load %arg30[%c1_173, %c0_174, %c0_175] : memref<3x16x16xf32, #tpu.memory_space<vmem>>, vector<1x16x16xf32>
    %205 = vector.shape_cast %204 : vector<1x16x16xf32> to vector<16x16xf32>
    %cst_176 = arith.constant dense<0.000000e+00> : vector<16x16xf32>
    %206 = tpu.matmul %205, %95, %cst_176 {dimension_numbers = #tpu.dot_dimension_numbers<[1], [0], [0], [1], [0, 0, 1, 1], [], []>} : vector<16x16xf32>, vector<16x16xf32>, vector<16x16xf32> -> vector<16x16xf32>
    %207 = arith.addf %203, %206 : vector<16x16xf32>
    %cst_177 = arith.constant dense<0.000000e+00> : vector<16x16xf32>
    %208 = tpu.matmul %95, %3, %cst_177 {dimension_numbers = #tpu.dot_dimension_numbers<[1], [0], [0], [1], [0, 0, 1, 1], [], []>} : vector<16x16xf32>, vector<16x16xf32>, vector<16x16xf32> -> vector<16x16xf32>
    %c2_178 = arith.constant 2 : index
    %c0_179 = arith.constant 0 : index
    %c0_180 = arith.constant 0 : index
    %209 = vector.load %arg30[%c2_178, %c0_179, %c0_180] : memref<3x16x16xf32, #tpu.memory_space<vmem>>, vector<1x16x16xf32>
    %210 = vector.shape_cast %209 : vector<1x16x16xf32> to vector<16x16xf32>
    %cst_181 = arith.constant dense<0.000000e+00> : vector<16x16xf32>
    %211 = tpu.matmul %210, %208, %cst_181 {dimension_numbers = #tpu.dot_dimension_numbers<[1], [0], [0], [1], [0, 0, 1, 1], [], []>} : vector<16x16xf32>, vector<16x16xf32>, vector<16x16xf32> -> vector<16x16xf32>
    %212 = arith.addf %207, %211 : vector<16x16xf32>
    %c0_182 = arith.constant 0 : index
    %c0_183 = arith.constant 0 : index
    %213 = vector.load %arg31[%c0_182, %c0_183] : memref<16x1xf32, #tpu.memory_space<vmem>>, vector<16x1xf32>
    %214 = vector.broadcast %213 : vector<16x1xf32> to vector<16x16xf32>
    %215 = arith.addf %212, %214 : vector<16x16xf32>
    %cst_184 = arith.constant 0.000000e+00 : f32
    %216 = vector.broadcast %cst_184 : f32 to vector<16x16xf32>
    %217 = arith.maximumf %215, %216 : vector<16x16xf32>
    %cst_185 = arith.constant 0.000000e+00 : f32
    %218 = vector.broadcast %cst_185 : f32 to vector<16x16xf32>
    %cst_186 = arith.constant dense<0.000000e+00> : vector<16x16xf32>
    %219 = tpu.matmul %217, %2, %cst_186 {dimension_numbers = #tpu.dot_dimension_numbers<[1], [0], [0], [1], [0, 0, 1, 1], [], []>} : vector<16x16xf32>, vector<16x16xf32>, vector<16x16xf32> -> vector<16x16xf32>
    %c0_187 = arith.constant 0 : index
    %c0_188 = arith.constant 0 : index
    %c0_189 = arith.constant 0 : index
    %220 = vector.load %arg32[%c0_187, %c0_188, %c0_189] : memref<3x16x16xf32, #tpu.memory_space<vmem>>, vector<1x16x16xf32>
    %221 = vector.shape_cast %220 : vector<1x16x16xf32> to vector<16x16xf32>
    %cst_190 = arith.constant dense<0.000000e+00> : vector<16x16xf32>
    %222 = tpu.matmul %221, %219, %cst_190 {dimension_numbers = #tpu.dot_dimension_numbers<[1], [0], [0], [1], [0, 0, 1, 1], [], []>} : vector<16x16xf32>, vector<16x16xf32>, vector<16x16xf32> -> vector<16x16xf32>
    %223 = arith.addf %218, %222 : vector<16x16xf32>
    %c1_191 = arith.constant 1 : index
    %c0_192 = arith.constant 0 : index
    %c0_193 = arith.constant 0 : index
    %224 = vector.load %arg32[%c1_191, %c0_192, %c0_193] : memref<3x16x16xf32, #tpu.memory_space<vmem>>, vector<1x16x16xf32>
    %225 = vector.shape_cast %224 : vector<1x16x16xf32> to vector<16x16xf32>
    %cst_194 = arith.constant dense<0.000000e+00> : vector<16x16xf32>
    %226 = tpu.matmul %225, %217, %cst_194 {dimension_numbers = #tpu.dot_dimension_numbers<[1], [0], [0], [1], [0, 0, 1, 1], [], []>} : vector<16x16xf32>, vector<16x16xf32>, vector<16x16xf32> -> vector<16x16xf32>
    %227 = arith.addf %223, %226 : vector<16x16xf32>
    %cst_195 = arith.constant dense<0.000000e+00> : vector<16x16xf32>
    %228 = tpu.matmul %217, %3, %cst_195 {dimension_numbers = #tpu.dot_dimension_numbers<[1], [0], [0], [1], [0, 0, 1, 1], [], []>} : vector<16x16xf32>, vector<16x16xf32>, vector<16x16xf32> -> vector<16x16xf32>
    %c2_196 = arith.constant 2 : index
    %c0_197 = arith.constant 0 : index
    %c0_198 = arith.constant 0 : index
    %229 = vector.load %arg32[%c2_196, %c0_197, %c0_198] : memref<3x16x16xf32, #tpu.memory_space<vmem>>, vector<1x16x16xf32>
    %230 = vector.shape_cast %229 : vector<1x16x16xf32> to vector<16x16xf32>
    %cst_199 = arith.constant dense<0.000000e+00> : vector<16x16xf32>
    %231 = tpu.matmul %230, %228, %cst_199 {dimension_numbers = #tpu.dot_dimension_numbers<[1], [0], [0], [1], [0, 0, 1, 1], [], []>} : vector<16x16xf32>, vector<16x16xf32>, vector<16x16xf32> -> vector<16x16xf32>
    %232 = arith.addf %227, %231 : vector<16x16xf32>
    %c0_200 = arith.constant 0 : index
    %c0_201 = arith.constant 0 : index
    %233 = vector.load %arg33[%c0_200, %c0_201] : memref<16x1xf32, #tpu.memory_space<vmem>>, vector<16x1xf32>
    %234 = vector.broadcast %233 : vector<16x1xf32> to vector<16x16xf32>
    %235 = arith.addf %232, %234 : vector<16x16xf32>
    %cst_202 = arith.constant 0.000000e+00 : f32
    %236 = vector.broadcast %cst_202 : f32 to vector<16x16xf32>
    %237 = arith.maximumf %235, %236 : vector<16x16xf32>
    %cst_203 = arith.constant dense<0.000000e+00> : vector<16x32xf32>
    %238 = tpu.matmul %237, %11, %cst_203 {dimension_numbers = #tpu.dot_dimension_numbers<[1], [0], [0], [1], [0, 0, 1, 1], [], []>} : vector<16x16xf32>, vector<16x32xf32>, vector<16x32xf32> -> vector<16x32xf32>
    %cst_204 = arith.constant 0.000000e+00 : f32
    %239 = vector.broadcast %cst_204 : f32 to vector<8x32xf32>
    %cst_205 = arith.constant dense<0.000000e+00> : vector<16x32xf32>
    %240 = tpu.matmul %238, %0, %cst_205 {dimension_numbers = #tpu.dot_dimension_numbers<[1], [0], [0], [1], [0, 0, 1, 1], [], []>} : vector<16x32xf32>, vector<32x32xf32>, vector<16x32xf32> -> vector<16x32xf32>
    %c0_206 = arith.constant 0 : index
    %c0_207 = arith.constant 0 : index
    %c0_208 = arith.constant 0 : index
    %241 = vector.load %arg34[%c0_206, %c0_207, %c0_208] : memref<3x8x16xf32, #tpu.memory_space<vmem>>, vector<1x8x16xf32>
    %242 = vector.shape_cast %241 : vector<1x8x16xf32> to vector<8x16xf32>
    %cst_209 = arith.constant dense<0.000000e+00> : vector<8x32xf32>
    %243 = tpu.matmul %242, %240, %cst_209 {dimension_numbers = #tpu.dot_dimension_numbers<[1], [0], [0], [1], [0, 0, 1, 1], [], []>} : vector<8x16xf32>, vector<16x32xf32>, vector<8x32xf32> -> vector<8x32xf32>
    %244 = arith.addf %239, %243 : vector<8x32xf32>
    %c1_210 = arith.constant 1 : index
    %c0_211 = arith.constant 0 : index
    %c0_212 = arith.constant 0 : index
    %245 = vector.load %arg34[%c1_210, %c0_211, %c0_212] : memref<3x8x16xf32, #tpu.memory_space<vmem>>, vector<1x8x16xf32>
    %246 = vector.shape_cast %245 : vector<1x8x16xf32> to vector<8x16xf32>
    %cst_213 = arith.constant dense<0.000000e+00> : vector<8x32xf32>
    %247 = tpu.matmul %246, %238, %cst_213 {dimension_numbers = #tpu.dot_dimension_numbers<[1], [0], [0], [1], [0, 0, 1, 1], [], []>} : vector<8x16xf32>, vector<16x32xf32>, vector<8x32xf32> -> vector<8x32xf32>
    %248 = arith.addf %244, %247 : vector<8x32xf32>
    %cst_214 = arith.constant dense<0.000000e+00> : vector<16x32xf32>
    %249 = tpu.matmul %238, %1, %cst_214 {dimension_numbers = #tpu.dot_dimension_numbers<[1], [0], [0], [1], [0, 0, 1, 1], [], []>} : vector<16x32xf32>, vector<32x32xf32>, vector<16x32xf32> -> vector<16x32xf32>
    %c2_215 = arith.constant 2 : index
    %c0_216 = arith.constant 0 : index
    %c0_217 = arith.constant 0 : index
    %250 = vector.load %arg34[%c2_215, %c0_216, %c0_217] : memref<3x8x16xf32, #tpu.memory_space<vmem>>, vector<1x8x16xf32>
    %251 = vector.shape_cast %250 : vector<1x8x16xf32> to vector<8x16xf32>
    %cst_218 = arith.constant dense<0.000000e+00> : vector<8x32xf32>
    %252 = tpu.matmul %251, %249, %cst_218 {dimension_numbers = #tpu.dot_dimension_numbers<[1], [0], [0], [1], [0, 0, 1, 1], [], []>} : vector<8x16xf32>, vector<16x32xf32>, vector<8x32xf32> -> vector<8x32xf32>
    %253 = arith.addf %248, %252 : vector<8x32xf32>
    %cst_219 = arith.constant dense<0.000000e+00> : vector<8x32xf32>
    %254 = tpu.matmul %52, %0, %cst_219 {dimension_numbers = #tpu.dot_dimension_numbers<[1], [0], [0], [1], [0, 0, 1, 1], [], []>} : vector<8x32xf32>, vector<32x32xf32>, vector<8x32xf32> -> vector<8x32xf32>
    %c0_220 = arith.constant 0 : index
    %c0_221 = arith.constant 0 : index
    %c0_222 = arith.constant 0 : index
    %255 = vector.load %arg35[%c0_220, %c0_221, %c0_222] : memref<3x8x8xf32, #tpu.memory_space<vmem>>, vector<1x8x8xf32>
    %256 = vector.shape_cast %255 : vector<1x8x8xf32> to vector<8x8xf32>
    %cst_223 = arith.constant dense<0.000000e+00> : vector<8x32xf32>
    %257 = tpu.matmul %256, %254, %cst_223 {dimension_numbers = #tpu.dot_dimension_numbers<[1], [0], [0], [1], [0, 0, 1, 1], [], []>} : vector<8x8xf32>, vector<8x32xf32>, vector<8x32xf32> -> vector<8x32xf32>
    %258 = arith.addf %253, %257 : vector<8x32xf32>
    %c1_224 = arith.constant 1 : index
    %c0_225 = arith.constant 0 : index
    %c0_226 = arith.constant 0 : index
    %259 = vector.load %arg35[%c1_224, %c0_225, %c0_226] : memref<3x8x8xf32, #tpu.memory_space<vmem>>, vector<1x8x8xf32>
    %260 = vector.shape_cast %259 : vector<1x8x8xf32> to vector<8x8xf32>
    %cst_227 = arith.constant dense<0.000000e+00> : vector<8x32xf32>
    %261 = tpu.matmul %260, %52, %cst_227 {dimension_numbers = #tpu.dot_dimension_numbers<[1], [0], [0], [1], [0, 0, 1, 1], [], []>} : vector<8x8xf32>, vector<8x32xf32>, vector<8x32xf32> -> vector<8x32xf32>
    %262 = arith.addf %258, %261 : vector<8x32xf32>
    %cst_228 = arith.constant dense<0.000000e+00> : vector<8x32xf32>
    %263 = tpu.matmul %52, %1, %cst_228 {dimension_numbers = #tpu.dot_dimension_numbers<[1], [0], [0], [1], [0, 0, 1, 1], [], []>} : vector<8x32xf32>, vector<32x32xf32>, vector<8x32xf32> -> vector<8x32xf32>
    %c2_229 = arith.constant 2 : index
    %c0_230 = arith.constant 0 : index
    %c0_231 = arith.constant 0 : index
    %264 = vector.load %arg35[%c2_229, %c0_230, %c0_231] : memref<3x8x8xf32, #tpu.memory_space<vmem>>, vector<1x8x8xf32>
    %265 = vector.shape_cast %264 : vector<1x8x8xf32> to vector<8x8xf32>
    %cst_232 = arith.constant dense<0.000000e+00> : vector<8x32xf32>
    %266 = tpu.matmul %265, %263, %cst_232 {dimension_numbers = #tpu.dot_dimension_numbers<[1], [0], [0], [1], [0, 0, 1, 1], [], []>} : vector<8x8xf32>, vector<8x32xf32>, vector<8x32xf32> -> vector<8x32xf32>
    %267 = arith.addf %262, %266 : vector<8x32xf32>
    %c0_233 = arith.constant 0 : index
    %c0_234 = arith.constant 0 : index
    %268 = vector.load %arg36[%c0_233, %c0_234] : memref<8x1xf32, #tpu.memory_space<vmem>>, vector<8x1xf32>
    %269 = vector.broadcast %268 : vector<8x1xf32> to vector<8x32xf32>
    %270 = arith.addf %267, %269 : vector<8x32xf32>
    %cst_235 = arith.constant 0.000000e+00 : f32
    %271 = vector.broadcast %cst_235 : f32 to vector<8x32xf32>
    %272 = arith.maximumf %270, %271 : vector<8x32xf32>
    %cst_236 = arith.constant 0.000000e+00 : f32
    %273 = vector.broadcast %cst_236 : f32 to vector<8x32xf32>
    %cst_237 = arith.constant dense<0.000000e+00> : vector<8x32xf32>
    %274 = tpu.matmul %272, %0, %cst_237 {dimension_numbers = #tpu.dot_dimension_numbers<[1], [0], [0], [1], [0, 0, 1, 1], [], []>} : vector<8x32xf32>, vector<32x32xf32>, vector<8x32xf32> -> vector<8x32xf32>
    %c0_238 = arith.constant 0 : index
    %c0_239 = arith.constant 0 : index
    %c0_240 = arith.constant 0 : index
    %275 = vector.load %arg37[%c0_238, %c0_239, %c0_240] : memref<3x8x8xf32, #tpu.memory_space<vmem>>, vector<1x8x8xf32>
    %276 = vector.shape_cast %275 : vector<1x8x8xf32> to vector<8x8xf32>
    %cst_241 = arith.constant dense<0.000000e+00> : vector<8x32xf32>
    %277 = tpu.matmul %276, %274, %cst_241 {dimension_numbers = #tpu.dot_dimension_numbers<[1], [0], [0], [1], [0, 0, 1, 1], [], []>} : vector<8x8xf32>, vector<8x32xf32>, vector<8x32xf32> -> vector<8x32xf32>
    %278 = arith.addf %273, %277 : vector<8x32xf32>
    %c1_242 = arith.constant 1 : index
    %c0_243 = arith.constant 0 : index
    %c0_244 = arith.constant 0 : index
    %279 = vector.load %arg37[%c1_242, %c0_243, %c0_244] : memref<3x8x8xf32, #tpu.memory_space<vmem>>, vector<1x8x8xf32>
    %280 = vector.shape_cast %279 : vector<1x8x8xf32> to vector<8x8xf32>
    %cst_245 = arith.constant dense<0.000000e+00> : vector<8x32xf32>
    %281 = tpu.matmul %280, %272, %cst_245 {dimension_numbers = #tpu.dot_dimension_numbers<[1], [0], [0], [1], [0, 0, 1, 1], [], []>} : vector<8x8xf32>, vector<8x32xf32>, vector<8x32xf32> -> vector<8x32xf32>
    %282 = arith.addf %278, %281 : vector<8x32xf32>
    %cst_246 = arith.constant dense<0.000000e+00> : vector<8x32xf32>
    %283 = tpu.matmul %272, %1, %cst_246 {dimension_numbers = #tpu.dot_dimension_numbers<[1], [0], [0], [1], [0, 0, 1, 1], [], []>} : vector<8x32xf32>, vector<32x32xf32>, vector<8x32xf32> -> vector<8x32xf32>
    %c2_247 = arith.constant 2 : index
    %c0_248 = arith.constant 0 : index
    %c0_249 = arith.constant 0 : index
    %284 = vector.load %arg37[%c2_247, %c0_248, %c0_249] : memref<3x8x8xf32, #tpu.memory_space<vmem>>, vector<1x8x8xf32>
    %285 = vector.shape_cast %284 : vector<1x8x8xf32> to vector<8x8xf32>
    %cst_250 = arith.constant dense<0.000000e+00> : vector<8x32xf32>
    %286 = tpu.matmul %285, %283, %cst_250 {dimension_numbers = #tpu.dot_dimension_numbers<[1], [0], [0], [1], [0, 0, 1, 1], [], []>} : vector<8x8xf32>, vector<8x32xf32>, vector<8x32xf32> -> vector<8x32xf32>
    %287 = arith.addf %282, %286 : vector<8x32xf32>
    %c0_251 = arith.constant 0 : index
    %c0_252 = arith.constant 0 : index
    %288 = vector.load %arg38[%c0_251, %c0_252] : memref<8x1xf32, #tpu.memory_space<vmem>>, vector<8x1xf32>
    %289 = vector.broadcast %288 : vector<8x1xf32> to vector<8x32xf32>
    %290 = arith.addf %287, %289 : vector<8x32xf32>
    %cst_253 = arith.constant 0.000000e+00 : f32
    %291 = vector.broadcast %cst_253 : f32 to vector<8x32xf32>
    %292 = arith.maximumf %290, %291 : vector<8x32xf32>
    %cst_254 = arith.constant 0.000000e+00 : f32
    %293 = vector.broadcast %cst_254 : f32 to vector<2x32xf32>
    %cst_255 = arith.constant dense<0.000000e+00> : vector<8x32xf32>
    %294 = tpu.matmul %292, %0, %cst_255 {dimension_numbers = #tpu.dot_dimension_numbers<[1], [0], [0], [1], [0, 0, 1, 1], [], []>} : vector<8x32xf32>, vector<32x32xf32>, vector<8x32xf32> -> vector<8x32xf32>
    %c0_256 = arith.constant 0 : index
    %c0_257 = arith.constant 0 : index
    %c0_258 = arith.constant 0 : index
    %295 = vector.load %arg39[%c0_256, %c0_257, %c0_258] : memref<3x2x8xf32, #tpu.memory_space<vmem>>, vector<1x2x8xf32>
    %296 = vector.shape_cast %295 : vector<1x2x8xf32> to vector<2x8xf32>
    %cst_259 = arith.constant dense<0.000000e+00> : vector<2x32xf32>
    %297 = tpu.matmul %296, %294, %cst_259 {dimension_numbers = #tpu.dot_dimension_numbers<[1], [0], [0], [1], [0, 0, 1, 1], [], []>} : vector<2x8xf32>, vector<8x32xf32>, vector<2x32xf32> -> vector<2x32xf32>
    %298 = arith.addf %293, %297 : vector<2x32xf32>
    %c1_260 = arith.constant 1 : index
    %c0_261 = arith.constant 0 : index
    %c0_262 = arith.constant 0 : index
    %299 = vector.load %arg39[%c1_260, %c0_261, %c0_262] : memref<3x2x8xf32, #tpu.memory_space<vmem>>, vector<1x2x8xf32>
    %300 = vector.shape_cast %299 : vector<1x2x8xf32> to vector<2x8xf32>
    %cst_263 = arith.constant dense<0.000000e+00> : vector<2x32xf32>
    %301 = tpu.matmul %300, %292, %cst_263 {dimension_numbers = #tpu.dot_dimension_numbers<[1], [0], [0], [1], [0, 0, 1, 1], [], []>} : vector<2x8xf32>, vector<8x32xf32>, vector<2x32xf32> -> vector<2x32xf32>
    %302 = arith.addf %298, %301 : vector<2x32xf32>
    %cst_264 = arith.constant dense<0.000000e+00> : vector<8x32xf32>
    %303 = tpu.matmul %292, %1, %cst_264 {dimension_numbers = #tpu.dot_dimension_numbers<[1], [0], [0], [1], [0, 0, 1, 1], [], []>} : vector<8x32xf32>, vector<32x32xf32>, vector<8x32xf32> -> vector<8x32xf32>
    %c2_265 = arith.constant 2 : index
    %c0_266 = arith.constant 0 : index
    %c0_267 = arith.constant 0 : index
    %304 = vector.load %arg39[%c2_265, %c0_266, %c0_267] : memref<3x2x8xf32, #tpu.memory_space<vmem>>, vector<1x2x8xf32>
    %305 = vector.shape_cast %304 : vector<1x2x8xf32> to vector<2x8xf32>
    %cst_268 = arith.constant dense<0.000000e+00> : vector<2x32xf32>
    %306 = tpu.matmul %305, %303, %cst_268 {dimension_numbers = #tpu.dot_dimension_numbers<[1], [0], [0], [1], [0, 0, 1, 1], [], []>} : vector<2x8xf32>, vector<8x32xf32>, vector<2x32xf32> -> vector<2x32xf32>
    %307 = arith.addf %302, %306 : vector<2x32xf32>
    %cst_269 = arith.constant dense<0.000000e+00> : vector<4x32xf32>
    %308 = tpu.matmul %12, %0, %cst_269 {dimension_numbers = #tpu.dot_dimension_numbers<[1], [0], [0], [1], [0, 0, 1, 1], [], []>} : vector<4x32xf32>, vector<32x32xf32>, vector<4x32xf32> -> vector<4x32xf32>
    %c0_270 = arith.constant 0 : index
    %c0_271 = arith.constant 0 : index
    %c0_272 = arith.constant 0 : index
    %309 = vector.load %arg40[%c0_270, %c0_271, %c0_272] : memref<3x2x4xf32, #tpu.memory_space<vmem>>, vector<1x2x4xf32>
    %310 = vector.shape_cast %309 : vector<1x2x4xf32> to vector<2x4xf32>
    %cst_273 = arith.constant dense<0.000000e+00> : vector<2x32xf32>
    %311 = tpu.matmul %310, %308, %cst_273 {dimension_numbers = #tpu.dot_dimension_numbers<[1], [0], [0], [1], [0, 0, 1, 1], [], []>} : vector<2x4xf32>, vector<4x32xf32>, vector<2x32xf32> -> vector<2x32xf32>
    %312 = arith.addf %307, %311 : vector<2x32xf32>
    %c1_274 = arith.constant 1 : index
    %c0_275 = arith.constant 0 : index
    %c0_276 = arith.constant 0 : index
    %313 = vector.load %arg40[%c1_274, %c0_275, %c0_276] : memref<3x2x4xf32, #tpu.memory_space<vmem>>, vector<1x2x4xf32>
    %314 = vector.shape_cast %313 : vector<1x2x4xf32> to vector<2x4xf32>
    %cst_277 = arith.constant dense<0.000000e+00> : vector<2x32xf32>
    %315 = tpu.matmul %314, %12, %cst_277 {dimension_numbers = #tpu.dot_dimension_numbers<[1], [0], [0], [1], [0, 0, 1, 1], [], []>} : vector<2x4xf32>, vector<4x32xf32>, vector<2x32xf32> -> vector<2x32xf32>
    %316 = arith.addf %312, %315 : vector<2x32xf32>
    %cst_278 = arith.constant dense<0.000000e+00> : vector<4x32xf32>
    %317 = tpu.matmul %12, %1, %cst_278 {dimension_numbers = #tpu.dot_dimension_numbers<[1], [0], [0], [1], [0, 0, 1, 1], [], []>} : vector<4x32xf32>, vector<32x32xf32>, vector<4x32xf32> -> vector<4x32xf32>
    %c2_279 = arith.constant 2 : index
    %c0_280 = arith.constant 0 : index
    %c0_281 = arith.constant 0 : index
    %318 = vector.load %arg40[%c2_279, %c0_280, %c0_281] : memref<3x2x4xf32, #tpu.memory_space<vmem>>, vector<1x2x4xf32>
    %319 = vector.shape_cast %318 : vector<1x2x4xf32> to vector<2x4xf32>
    %cst_282 = arith.constant dense<0.000000e+00> : vector<2x32xf32>
    %320 = tpu.matmul %319, %317, %cst_282 {dimension_numbers = #tpu.dot_dimension_numbers<[1], [0], [0], [1], [0, 0, 1, 1], [], []>} : vector<2x4xf32>, vector<4x32xf32>, vector<2x32xf32> -> vector<2x32xf32>
    %321 = arith.addf %316, %320 : vector<2x32xf32>
    %c0_283 = arith.constant 0 : index
    %c0_284 = arith.constant 0 : index
    %322 = vector.load %arg41[%c0_283, %c0_284] : memref<2x1xf32, #tpu.memory_space<vmem>>, vector<2x1xf32>
    %323 = vector.broadcast %322 : vector<2x1xf32> to vector<2x32xf32>
    %324 = arith.addf %321, %323 : vector<2x32xf32>
    %325 = arith.negf %324 : vector<2x32xf32>
    %326 = math.exp %325 : vector<2x32xf32>
    %cst_285 = arith.constant 1.000000e+00 : f32
    %327 = vector.broadcast %cst_285 : f32 to vector<2x32xf32>
    %328 = arith.addf %327, %326 : vector<2x32xf32>
    %329 = arith.divf %327, %328 : vector<2x32xf32>
    %c0_286 = arith.constant 0 : index
    %c0_287 = arith.constant 0 : index
    %330 = vector.load %arg42[%c0_286, %c0_287] : memref<2x32xf32, #tpu.memory_space<vmem>>, vector<2x32xf32>
    tpu.vector_store %arg42[%c0_286, %c0_287], %329 {strides = array<i32>} : memref<2x32xf32, #tpu.memory_space<vmem>>, vector<2x32xf32>,
    return
  }
}

</mosaic_0001>

<bundles_post_ra>
// kernel: unet_forward.1
= control target key start
LH: loop header
LB: loop body
LE: loop exit
PB: predicated region body
PF: predicated region fallthrough
CT: control target
= control target key end

     0   :  { %v7531_v0 = vmov 0.0|0.0   ;;  %s7532_s3 = smov 1   ;;  %vm7533_vm0 = vmmov 0   ;;  %v7534_v1 = vmov 0.0   ;;  %s7535_s10 = smov 13   ;;  %vm285_vm1 = vcmask 1043456   ;;  %s8123_s0 = inlined_call_operand.smem [shape: u32[43], index: -1, kind: input, shape index: {}] }
   0x1   :  { %7221 = vmatprep.subr.bf16.mxu0 %v7531_v0  ;;  %s6232_s6 = sld [smem:[%s8123_s0 + %s7532_s3]]   ;;  %6707 = vmatprep.mubr.msk.f32.mxu0 %vm7533_vm0, %v7534_v1  ;;  %vm281_vm2 = vcmask 31744   ;;  %vm204_vm3 = vcmask 261120   ;;  %s7536_s14 = smov 2   ;;  %v7537_v21 = vmov 0   ;;  %vm667_vm4 = vcmask 64512  }
   0x2   :  { %s7591_s9 = sld [smem:[%s8123_s0]]   ;;  %6710 = vmatprep.subr.mxu1 %v7534_v1  ;;  %6712 = vmatprep.mubr.msk.f32.mxu1 %vm7533_vm0, %v7534_v1  ;;  %s7538_s18 = smov 14   ;;  %vm1112_vm5 = vcmask 130048   ;;  %vm6226_vm6 = vcmask 254976  }
   0x3   :  { %s7599_s13 = sld [smem:[%s8123_s0 + %s7535_s10]]   ;;  %7516 = vset.pattern.permute.xlu0 %v7537_v21  ;;  %s7539_s22 = smov 16   ;;  %7517 = vset.pattern.permute.xlu1 %v7537_v21 }
   0x4   :  { %s6233_s17 = sld [smem:[%s8123_s0 + %s7536_s14]]   ;;  %s7540_s26 = smov 20  }
   0x5   :  { %s6245_s21 = sld [smem:[%s8123_s0 + %s7538_s18]]   ;;  %s7541_s30 = smov 15  }
   0x6   :  { %s6247_s25 = sld [smem:[%s8123_s0 + %s7539_s22]]   ;;  %s7542_s4 = smov 7  }
   0x7   :  { %v174_v2 = vld [vmem:[%s6232_s6] sm:$0xff]  ;;  %v175_v3 = vld [vmem:[%s6232_s6 + $0x8] sm:$0xff]  ;;  %v176_v4 = vld [vmem:[%s6232_s6 + $0x10] sm:$0xff]  ;;  %s7651_s29 = sld [smem:[%s8123_s0 + %s7540_s26]]   ;;  %s7543_s8 = smov 8  }
   0x8   :  { %v7601_v5 = vpack.c.bf16 %v175_v3, %v174_v2  ;;  %v177_v6 = vld [vmem:[%s6232_s6 + $0x18] sm:$0xff]  ;;  %v203_v7 = vld [vmem:[%s7591_s9] sm:$0xf]  ;;  %s6246_s3 = sld [smem:[%s8123_s0 + %s7541_s30]]  }
   0x9   :  { %v6275_v8 = vld [vmem:[%s7599_s13 + $0x8] sm:$0xff]  ;;  %6711 = vmatpush3.msk.msra.mxu1 %vm285_vm1, %v203_v7  ;;  %v7607_v9 = vpack.c.bf16 %v177_v6, %v176_v4  ;;  %v278_v14 = vld [vmem:[%s7599_s13] sm:$0xff]  ;;  %v6281_v28 = vld [vmem:[%s7599_s13 + $0x10] sm:$0xff]  ;;  %s6238_s7 = sld [smem:[%s8123_s0 + %s7542_s4]]   ;;  %s7544_s13 = smov 3  }
   0xa   :  { %7223 = vmatpush3.bf16.msra.mxu0 %v7601_v5  ;;  %6713 = vmatmul.mubr.msk.f32.vlgmr.msra.gmra.mrb[0].mxu1 %vm281_vm2, %v6275_v8  ;;  %v178_v12 = vld [vmem:[%s6233_s17] sm:$0xff]  ;;  %v179_v13 = vld [vmem:[%s6233_s17 + $0x8] sm:$0xff]  ;;  %v180_v17 = vld [vmem:[%s6233_s17 + $0x10] sm:$0xff]  ;;  %s6239_s12 = sld [smem:[%s8123_s0 + %s7543_s8]]  }
   0xb   :  { %7224 = vmatprep.subr.bf16.mxu0 %v7531_v0  ;;  %6715 = vmatprep.subr.mxu1 %v7534_v1  ;;  %v7623_v15 = vpack.c.bf16 %v179_v13, %v178_v12  ;;  %v181_v18 = vld [vmem:[%s6233_s17 + $0x18] sm:$0xff]  ;;  %v583_v22 = vld [vmem:[%s6245_s21] sm:$0xff]  ;;  %s6234_s16 = sld [smem:[%s8123_s0 + %s7544_s13]]   ;;  %s7545_s17 = smov 17  }
   0xc   :  { %6717 = vmatprep.mubr.msk.f32.mxu1 %vm7533_vm0, %v7534_v1  ;;  %v7632_v20 = vpack.c.bf16 %v181_v18, %v180_v17  ;;  %586 = vperm.xlu0 %7516, %v583_v22   ;;  %v960_v23 = vld [vmem:[%s6247_s25] sm:$0xff]  ;;  %s7719_s20 = sld [smem:[%s8123_s0 + %s7545_s17]]   ;;  %s7546_s21 = smov 4  }
   0xd   :  { %v1934_v24 = vld [vmem:[%s7651_s29] sm:$0xff]  ;;  %s6235_s24 = sld [smem:[%s8123_s0 + %s7546_s21]]   ;;  %s7547_s25 = smov 18  }
   0xe   :  { %7226 = vmatpush3.bf16.msra.mxu0 %v7607_v9  ;;  %v6285_v37 = vld [vmem:[%s6246_s3 + $0x8] sm:$0xff]  ;;  %v664_v38 = vld [vmem:[%s6246_s3] sm:$0xff]  ;;  %v6289_v43 = vld [vmem:[%s6246_s3 + $0x10] sm:$0xff]  ;;  %s6249_s28 = sld [smem:[%s8123_s0 + %s7547_s25]]   ;;  %s7549_s3 = smov 9  }
   0xf   :  { %6731 = vmatprep.subr.mxu0 %v7534_v1  ;;  %v188_v46 = vld [vmem:[%s6238_s7] sm:$0xff]  ;;  %v189_v47 = vld [vmem:[%s6238_s7 + $0x8] sm:$0xff]  ;;  %v190_v52 = vld [vmem:[%s6238_s7 + $0x10] sm:$0xff]  ;;  %s6240_s6 = sld [smem:[%s8123_s0 + %s7549_s3]]  }
  0x10   :  { %963 = vperm.xlu0 %7516, %v960_v23   ;;  %v192_v48 = vld [vmem:[%s6239_s12] sm:$0xff]  ;;  %v7246_v49 = vpack.c.bf16 %v189_v47, %v188_v46  ;;  %v193_v50 = vld [vmem:[%s6239_s12 + $0x8] sm:$0xff]  ;;  %v191_v53 = vld [vmem:[%s6238_s7 + $0x18] sm:$0xff]  ;;  %s7550_s7 = smov 10  }
  0x11   :  { %6708 = vmatmul.mubr.msk.f32.vlgmr.msra.gmra.mrb[0].mxu0 %vm204_vm3, %v203_v7  ;;  %v7252_v51 = vpack.c.bf16 %v193_v50, %v192_v48  ;;  %v194_v54 = vld [vmem:[%s6239_s12 + $0x10] sm:$0xff]  ;;  %v7249_v55 = vpack.c.bf16 %v191_v53, %v190_v52  ;;  %v195_v56 = vld [vmem:[%s6239_s12 + $0x18] sm:$0xff]  ;;  %v182_v6 = vld [vmem:[%s6234_s16] sm:$0xff]  ;;  %s6241_s11 = sld [smem:[%s8123_s0 + %s7550_s7]]   ;;  %s7551_s12 = smov 21  }
  0x12   :  { %6733 = vmatprep.mubr.msk.f32.mxu0 %vm7533_vm0, %v7534_v1  ;;  %v7255_v57 = vpack.c.bf16 %v195_v56, %v194_v54  ;;  %v6295_v22 = vld [vmem:[%s7719_s20 + $0x18] sm:$0xff]  ;;  %v1186_v23 = vld [vmem:[%s7719_s20] sm:$0xff]  ;;  %s6252_s15 = sld [smem:[%s8123_s0 + %s7551_s12]]  }
  0x13   :  { %v185_v12 = vld [vmem:[%s6235_s24 + $0x8] sm:$0xff] }
  0x14   :  { %1938 = vperm.xlu0 %7516, %v1934_v24   ;;  %v1509_v24 = vld [vmem:[%s6249_s28] sm:$0xff] }
  0x15   :  { %1513 = vperm.xlu1 %7517, %v1509_v24   ;;  %v196_v56 = vld [vmem:[%s6240_s6] sm:$0xff] }
  0x18   :  { %v2135_v24 = vld [vmem:[%s6252_s15] sm:$0xff] }
  0x8b   :  { %v587_v34 = vpop.permute.xlu0 %586 }
  0x8f   :  { %v964_v2 = vpop.permute.xlu0 %963 }
  0xdd   :  { %v354_v10 = vpop.f32.mrb[0].mxu1 }
  0xde   :  { %v6714_v11 = vpop.f32.mrb[1].mxu1 }
  0xdf   :  { %v184_v11 = vld [vmem:[%s6235_s24] sm:$0xff]  ;;  %s7554_s24 = smov 5  }
  0xe0   :  { %v7726_v17 = vpack.c.bf16 %v185_v12, %v184_v11  ;;  %s6236_s27 = sld [smem:[%s8123_s0 + %s7554_s24]]   ;;  %s7576_s24 = smov 42  }
  0xe4   :  { %v7625_v16 = vpop.f32.mrb[0].mxu0 }
  0xe5   :  { %v6709_v19 = vpop.f32.mrb[1].mxu0  ;;  %6716 = vmatpush3.msk.msra.mxu1 %vm285_vm1, %v7625_v16 }
  0xe6   :  { %6718 = vmatmul.mubr.msk.f32.vlgmr.msra.gmra.mrb[2].mxu1 %vm281_vm2, %v278_v14  ;;  %7227 = vmatprep.subr.bf16.mxu1 %v7531_v0 }
  0xe7   :  { %7229 = vmatpush3.bf16.msra.mxu1 %v7623_v15  ;;  %6728 = vmatprep.mubr.msk.f32.mxu1 %vm7533_vm0, %v7534_v1 }
  0xe8   :  { %7230 = vmatprep.subr.bf16.mxu1 %v7531_v0 }
  0xeb   :  { %7232 = vmatpush3.bf16.msra.mxu1 %v7632_v20 }
  0xec   :  { %6747 = vmatprep.subr.mxu1 %v7534_v1 }
  0xee   :  { %6729 = vmatmul.mubr.msk.f32.vlgmr.msra.gmra.mrb[4].mxu1 %vm204_vm3, %v203_v7  ;;  %v183_v7 = vld [vmem:[%s6234_s16 + $0x8] sm:$0xff]  ;;  %s7552_s16 = smov 22  }
  0xef   :  { %6749 = vmatprep.mubr.msk.f32.mxu1 %vm7533_vm0, %v7534_v1  ;;  %v7712_v8 = vpack.c.bf16 %v183_v7, %v182_v6  ;;  %s6253_s19 = sld [smem:[%s8123_s0 + %s7552_s16]]  }
 0x1b9   :  { %v430_v25 = vpop.f32.mrb[2].mxu1 }
 0x1ba   :  { %v431_v26 = vadd.f32 %v430_v25, %v354_v10  ;;  %v6719_v27 = vpop.f32.mrb[3].mxu1  ;;  %v6294_v10 = vld [vmem:[%s7719_s20 + $0x10] sm:$0xff]  ;;  %v1510_v25 = vld [vmem:[%s6249_s28 + $0x8] sm:$0xff]  ;;  %s7555_s28 = smov 6  }
 0x1bb   :  { %1518 = vperm.xlu1 %7517, %v1510_v25   ;;  %v2149_v25 = vld [vmem:[%s6253_s19] sm:$0xff]  ;;  %s6237_s1 = sld [smem:[%s8123_s0 + %s7555_s28]]  }
 0x1c1   :  { %v7655_v29 = vpop.f32.mrb[4].mxu1 }
 0x1c2   :  { %v6730_v30 = vpop.f32.mrb[5].mxu1  ;;  %6732 = vmatpush3.msk.msra.mxu0 %vm285_vm1, %v7655_v29 }
 0x1c3   :  { %6734 = vmatmul.mubr.msk.f32.vlgmr.msra.gmra.mrb[2].mxu0 %vm281_vm2, %v6281_v28  ;;  %7233 = vmatprep.subr.bf16.mxu0 %v7531_v0  ;;  %v1187_v28 = vld [vmem:[%s7719_s20 + $0x8] sm:$0xff] }
 0x1c4   :  { %7235 = vmatpush3.bf16.msra.mxu0 %v7601_v5  ;;  %6744 = vmatprep.mubr.msk.f32.mxu0 %vm7533_vm0, %v7534_v1 }
 0x1c5   :  { %7236 = vmatprep.subr.bf16.mxu0 %v7531_v0 }
 0x1c8   :  { %7238 = vmatpush3.bf16.msra.mxu0 %v7607_v9 }
 0x1c9   :  { %7239 = vmatprep.subr.bf16.mxu0 %v7531_v0 }
 0x296   :  { %v578_v31 = vpop.f32.mrb[2].mxu0 }
 0x297   :  { %v582_v32 = vadd.f32 %v578_v31, %v431_v26  ;;  %v6735_v33 = vpop.f32.mrb[3].mxu0  ;;  %v1935_v26 = vld [vmem:[%s7651_s29 + $0x8] sm:$0xff]  ;;  %v6301_v31 = vld [vmem:[%s7719_s20 + $0x20] sm:$0xff]  ;;  %s7548_s29 = smov 19  }
 0x298   :  { %1943 = vperm.xlu1 %7517, %v1935_v26   ;;  %s7754_s2 = sld [smem:[%s8123_s0 + %s7548_s29]]   ;;  %v2150_v26 = vld [vmem:[%s6253_s19 + $0x8] sm:$0xff]  ;;  %s7560_s19 = smov 31  }
 0x299   :  { %v589_v35 = vadd.f32 %v587_v34, %v582_v32  ;;  %v6302_v34 = vld [vmem:[%s7719_s20 + $0x28] sm:$0xff]  ;;  %s7553_s20 = smov 24   ;;  %s6262_s22 = sld [smem:[%s8123_s0 + %s7560_s19]]  }
 0x29a   :  { %s6255_s23 = sld [smem:[%s8123_s0 + %s7553_s20]]  }
 0x29b   :  { %v590_v36 = vmax.f32 %v589_v35, 0.0  ;;  %v1514_v35 = vpop.permute.xlu1 %1513 }
 0x29d   :  { %6745 = vmatmul.mubr.msk.f32.vlgmr.msra.gmra.mrb[4].mxu0 %vm204_vm3, %v590_v36  ;;  %6748 = vmatpush3.msra.mxu1 %v590_v36 }
 0x29e   :  { %7241 = vmatpush3.bf16.msra.mxu0 %v7623_v15  ;;  %6765 = vmatprep.mubr.msk.f32.mxu0 %vm7533_vm0, %v7534_v1  ;;  %v1606_v46 = vld [vmem:[%s7754_s2] sm:$0xff]  ;;  %v1607_v53 = vld [vmem:[%s7754_s2 + $0x8] sm:$0xff] }
 0x29f   :  { %7242 = vmatprep.subr.bf16.mxu0 %v7531_v0  ;;  %6750 = vmatmul.mubr.msk.f32.vlgmr.msra.gmra.mrb[6].mxu1 %vm667_vm4, %v6285_v37  ;;  %v6315_v54 = vld [vmem:[%s7754_s2 + $0x20] sm:$0xff] }
 0x2a0   :  { %6752 = vmatprep.subr.mxu1 %v7534_v1  ;;  %6754 = vmatprep.mubr.msk.f32.mxu1 %vm7533_vm0, %v7534_v1 }
 0x2a2   :  { %7244 = vmatpush3.bf16.msra.mxu0 %v7632_v20 }
 0x2a3   :  { %7251 = vmatprep.subr.bf16.mxu0 %v7531_v0 }
 0x2a5   :  { %6766 = vmatmul.mubr.msk.f32.vlgmr.msra.gmra.mrb[6].mxu0 %vm204_vm3, %v590_v36  ;;  %v1519_v36 = vpop.permute.xlu1 %1518 }
 0x2a6   :  { %6792 = vmatprep.mubr.msk.f32.mxu0 %vm7533_vm0, %v7534_v1  ;;  %7253 = vmatpush3.bf16.msra.mxu0 %v7252_v51 }
 0x2a7   :  { %7254 = vmatprep.subr.bf16.mxu0 %v7531_v0 }
 0x2aa   :  { %7256 = vmatpush3.bf16.msra.mxu0 %v7255_v57  ;;  %v197_v57 = vld [vmem:[%s6240_s6 + $0x8] sm:$0xff]  ;;  %s7557_s6 = smov 25  }
 0x2ab   :  { %s7835_s10 = sld [smem:[%s8123_s0 + %s7557_s6]]  }
 0x370   :  { %v660_v39 = vpop.f32.mrb[4].mxu0 }
 0x371   :  { %v6746_v40 = vpop.f32.mrb[5].mxu0  ;;  %6753 = vmatpush3.msra.mxu1 %v660_v39 }
 0x372   :  { %6755 = vmatmul.mubr.msk.f32.vlgmr.msra.gmra.mrb[8].mxu1 %vm667_vm4, %v664_v38  ;;  %6768 = vmatprep.subr.mxu1 %v7534_v1  ;;  %v737_v41 = vpop.f32.mrb[6].mxu1 }
 0x373   :  { %6770 = vmatprep.mubr.msk.f32.mxu1 %vm7533_vm0, %v7534_v1  ;;  %v6751_v42 = vpop.f32.mrb[7].mxu1 }
 0x378   :  { %v880_v44 = vpop.f32.mrb[6].mxu0 }
 0x379   :  { %v6767_v45 = vpop.f32.mrb[7].mxu0  ;;  %6769 = vmatpush3.msra.mxu1 %v880_v44 }
 0x37a   :  { %6771 = vmatmul.mubr.msk.f32.vlgmr.msra.gmra.mrb[10].mxu1 %vm667_vm4, %v6289_v43  ;;  %7245 = vmatprep.subr.bf16.mxu1 %v7531_v0  ;;  %v6307_v43 = vld [vmem:[%s7754_s2 + $0x10] sm:$0xff]  ;;  %v6308_v45 = vld [vmem:[%s7754_s2 + $0x18] sm:$0xff] }
 0x37b   :  { %6781 = vmatprep.mubr.msk.f32.mxu1 %vm7533_vm0, %v7534_v1  ;;  %7247 = vmatpush3.bf16.msra.mxu1 %v7246_v49 }
 0x37c   :  { %7248 = vmatprep.subr.bf16.mxu1 %v7531_v0 }
 0x37f   :  { %7250 = vmatpush3.bf16.msra.mxu1 %v7249_v55  ;;  %v6316_v55 = vld [vmem:[%s7754_s2 + $0x28] sm:$0xff]  ;;  %s7556_s2 = smov 23  }
 0x380   :  { %7257 = vmatprep.subr.bf16.mxu1 %v7531_v0  ;;  %s7812_s5 = sld [smem:[%s8123_s0 + %s7556_s2]]  }
 0x445   :  { %v810_v58 = vpop.f32.mrb[8].mxu1 }
 0x446   :  { %v811_v59 = vadd.f32 %v810_v58, %v737_v41  ;;  %v6756_v60 = vpop.f32.mrb[9].mxu1  ;;  %v7283_v58 = vpack.c.bf16 %v197_v57, %v196_v56 }
 0x447   :  { %v199_v60 = vld [vmem:[%s6241_s11 + $0x8] sm:$0xff] }
 0x44d   :  { %v955_v61 = vpop.f32.mrb[10].mxu1 }
 0x44e   :  { %v959_v62 = vadd.f32 %v955_v61, %v811_v59  ;;  %v6772_v63 = vpop.f32.mrb[11].mxu1  ;;  %v198_v59 = vld [vmem:[%s6241_s11] sm:$0xff]  ;;  %s7558_s11 = smov 26  }
 0x44f   :  { %v7287_v61 = vpack.c.bf16 %v199_v60, %v198_v59  ;;  %s6257_s14 = sld [smem:[%s8123_s0 + %s7558_s11]]  }
 0x450   :  { %v966_v3 = vadd.f32 %v964_v2, %v959_v62  ;;  %v1944_v62 = vpop.permute.xlu1 %1943  ;;  %v1939_v2 = vpop.permute.xlu0 %1938 }
 0x452   :  { %v7701_v4 = vmax.f32 %v966_v3, 0.0 }
 0x454   :  { %6782 = vmatmul.mubr.msk.f32.vlgmr.msra.gmra.mrb[12].mxu1 %vm204_vm3, %v7701_v4  ;;  %6793 = vmatmul.mubr.msk.f32.vlgmr.msra.gmra.mrb[8].mxu0 %vm204_vm3, %v7701_v4 }
 0x455   :  { %6799 = vmatprep.mubr.msk.f32.mxu1 %vm7533_vm0, %v7534_v1  ;;  %7259 = vmatpush3.bf16.msra.mxu1 %v7712_v8 }
 0x456   :  { %7260 = vmatprep.subr.bf16.mxu1 %v7531_v0  ;;  %6804 = vmatprep.mubr.msk.f32.mxu0 %vm667_vm4, %v6294_v10 }
 0x527   :  { %v1037_v13 = vpop.f32.mrb[12].mxu1  ;;  %v1107_v14 = vpop.f32.mrb[8].mxu0 }
 0x528   :  { %v1111_v18 = vmax.f32 %v1037_v13, %v1107_v14  ;;  %v6783_v19 = vpop.f32.mrb[13].mxu1  ;;  %v6794_v21 = vpop.f32.mrb[9].mxu0 }
 0x52a   :  { %6800 = vmatmul.mubr.msk.f32.vlgmr.msra.gmra.mrb[14].mxu1 %vm1112_vm5, %v1111_v18  ;;  %6802 = vmatprep.subr.mxu0 %v1111_v18 }
 0x52b   :  { %6803 = vmatpush3.msra.mxu0 %v1111_v18  ;;  %7262 = vmatpush3.bf16.msra.mxu1 %v7726_v17 }
 0x52c   :  { %6816 = vmatprep.mubr.msk.f32.mxu1 %vm7533_vm0, %v7534_v1  ;;  %6805 = vmatmul.mubr.msk.f32.vlgmr.msra.gmra.mrb[10].mxu0 %vm667_vm4, %v6295_v22 }
 0x52d   :  { %7264 = vmatprep.subr.bf16.mxu1 %v7712_v8  ;;  %6809 = vmatprep.mubr.msk.f32.mxu0 %vm667_vm4, %v1186_v23 }
 0x52e   :  { %6817 = vmatmul.mubr.msk.f32.vlgmr.msra.gmra.mrb[16].mxu1 %vm1112_vm5, %v1111_v18 }
 0x52f   :  { %7266 = vmatpush3.bf16.msra.mxu1 %v7712_v8 }
 0x5fd   :  { %v1182_v27 = vpop.f32.mrb[14].mxu1 }
 0x5fe   :  { %v6801_v30 = vpop.f32.mrb[15].mxu1  ;;  %6807 = vmatprep.subr.mxu0 %v1182_v27 }
 0x5ff   :  { %6808 = vmatpush3.msra.mxu0 %v1182_v27  ;;  %v2573_v27 = vld [vmem:[%s6255_s23 + $0x8] sm:$0xff] }
 0x600   :  { %6810 = vmatmul.mubr.msk.f32.vlgmr.msra.gmra.mrb[10].mxu0 %vm667_vm4, %v1187_v28 }
 0x601   :  { %v1419_v32 = vpop.f32.mrb[16].mxu1  ;;  %6821 = vmatprep.mubr.msk.f32.mxu0 %vm667_vm4, %v6301_v31 }
 0x602   :  { %v6818_v33 = vpop.f32.mrb[17].mxu1  ;;  %6819 = vmatprep.subr.mxu0 %v1419_v32 }
 0x603   :  { %6820 = vmatpush3.msra.mxu0 %v1419_v32 }
 0x604   :  { %7276 = vmatprep.subr.bf16.mxu0 %v7726_v17 }
 0x608   :  { %6822 = vmatmul.mubr.msk.f32.vlgmr.msra.gmra.mrb[10].mxu0 %vm667_vm4, %v6302_v34 }
 0x609   :  { %7278 = vmatpush3.bf16.msra.mxu0 %v7726_v17 }
 0x60a   :  { %7284 = vmatprep.subr.bf16.mxu0 %v7283_v58 }
 0x6db   :  { %v6823_v37 = vpop.f32.mrb[10].mxu0 }
 0x6dc   :  { %v1522_v38 = vadd.f32 %v6823_v37, %v1519_v36  ;;  %v1498_v39 = vpop.f32.mrb[11].mxu0 }
 0x6dd   :  { %v1521_v40 = vadd.f32 %v1514_v35, %v1498_v39  ;;  %v2136_v39 = vld [vmem:[%s6252_s15 + $0x8] sm:$0xff]  ;;  %s7559_s15 = smov 28  }
 0x6de   :  { %v1524_v41 = vmax.f32 %v1522_v38, 0.0  ;;  %s7844_s18 = sld [smem:[%s8123_s0 + %s7559_s15]]  }
 0x6df   :  { %v1523_v42 = vmax.f32 %v1521_v40, 0.0  ;;  %v2572_v40 = vld [vmem:[%s6255_s23] sm:$0xff]  ;;  %s7561_s23 = smov 33  }
 0x6e0   :  { %s7853_s26 = sld [smem:[%s8123_s0 + %s7561_s23]]  }
 0x6e1   :  { %6828 = vmatprep.mubr.msk.f32.mxu1 %vm1112_vm5, %v1523_v42  ;;  %6849 = vmatprep.mubr.msk.f32.mxu0 %vm1112_vm5, %v1523_v42  ;;  %v7267_v44 = vpack.c.bf16 %v1524_v41, %v1523_v42  ;;  %v187_v42 = vld [vmem:[%s6237_s1] sm:$0xff]  ;;  %s7563_s1 = smov 36  }
 0x6e2   :  { %6829 = vmatmul.mubr.msk.f32.vlgmr.msra.gmra.mrb[18].mxu1 %vm1112_vm5, %v1524_v41  ;;  %6850 = vmatmul.mubr.msk.f32.vlgmr.msra.gmra.mrb[12].mxu0 %vm1112_vm5, %v1524_v41  ;;  %v186_v41 = vld [vmem:[%s6236_s27] sm:$0xff]  ;;  %s7562_s27 = smov 38   ;;  %s6267_s4 = sld [smem:[%s8123_s0 + %s7563_s1]]  }
 0x6e3   :  { %7268 = vmatprep.subr.bf16.mxu1 %v7267_v44  ;;  %6835 = vmatprep.mubr.msk.f32.mxu1 %vm1112_vm5, %v6307_v43  ;;  %v6325_v43 = vld [vmem:[%s7812_s5 + $0x10] sm:$0xff]  ;;  %s6269_s30 = sld [smem:[%s8123_s0 + %s7562_s27]]  }
 0x6e4   :  { %7270 = vmatpush3.bf16.msra.mxu1 %v7267_v44  ;;  %7286 = vmatpush3.bf16.msra.mxu0 %v7283_v58  ;;  %s6273_s27 = sld [smem:[%s8123_s0 + %s7576_s24]]  }
 0x6e5   :  { %7288 = vmatprep.subr.bf16.mxu0 %v7287_v61 }
 0x6e7   :  { %6836 = vmatmul.mubr.msk.f32.vlgmr.msra.gmra.mrb[20].mxu1 %vm1112_vm5, %v6308_v45 }
 0x6e8   :  { %6842 = vmatprep.mubr.msk.f32.mxu1 %vm1112_vm5, %v1606_v46 }
 0x7b5   :  { %v6830_v47 = vpop.f32.mrb[18].mxu1  ;;  %v6851_v48 = vpop.f32.mrb[12].mxu0 }
 0x7b6   :  { %v1597_v49 = vpop.f32.mrb[19].mxu1  ;;  %v1839_v50 = vpop.f32.mrb[13].mxu0 }
 0x7b7   :  { %v7271_v51 = vpack.c.bf16 %v6830_v47, %v1597_v49  ;;  %v7279_v52 = vpack.c.bf16 %v6851_v48, %v1839_v50 }
 0x7b9   :  { %7272 = vmatprep.subr.bf16.mxu1 %v7271_v51 }
 0x7ba   :  { %7274 = vmatpush3.bf16.msra.mxu1 %v7271_v51 }
 0x7bb   :  { %7280 = vmatprep.subr.bf16.mxu1 %v7279_v52 }
 0x7bd   :  { %6843 = vmatmul.mubr.msk.f32.vlgmr.msra.gmra.mrb[20].mxu1 %vm1112_vm5, %v1607_v53 }
 0x7be   :  { %7282 = vmatpush3.bf16.msra.mxu1 %v7279_v52  ;;  %6856 = vmatprep.mubr.msk.f32.mxu1 %vm1112_vm5, %v6315_v54 }
 0x7bf   :  { %6873 = vmatprep.subr.mxu1 %v186_v41 }
 0x7c5   :  { %6857 = vmatmul.mubr.msk.f32.vlgmr.msra.gmra.mrb[20].mxu1 %vm1112_vm5, %v6316_v55 }
 0x7c6   :  { %6874 = vmatpush3.msra.mxu1 %v186_v41 }
 0x7c7   :  { %6892 = vmatprep.subr.mxu1 %v187_v42 }
 0x898   :  { %v6858_v63 = vpop.f32.mrb[20].mxu1 }
 0x899   :  { %v1947_v3 = vadd.f32 %v6858_v63, %v1944_v62  ;;  %v1923_v6 = vpop.f32.mrb[21].mxu1  ;;  %v6326_v63 = vld [vmem:[%s7812_s5 + $0x18] sm:$0xff] }
 0x89a   :  { %v1946_v7 = vadd.f32 %v1939_v2, %v1923_v6  ;;  %v2244_v2 = vld [vmem:[%s7812_s5] sm:$0xff] }
 0x89b   :  { %v7780_v11 = vmax.f32 %v1947_v3, 0.0 }
 0x89c   :  { %v7778_v10 = vmax.f32 %v1946_v7, 0.0 }
 0x89e   :  { %6863 = vmatprep.mubr.msk.f32.mxu0 %vm1112_vm5, %v7778_v10 }
 0x89f   :  { %6864 = vmatmul.mubr.msk.f32.vlgmr.msra.gmra.mrb[14].mxu0 %vm1112_vm5, %v7780_v11 }
 0x8a0   :  { %7290 = vmatpush3.bf16.msra.mxu0 %v7287_v61  ;;  %6870 = vmatprep.mubr.msk.f32.mxu0 %vm1112_vm5, %v7778_v10 }
 0x8a3   :  { %6871 = vmatmul.mubr.msk.f32.vlgmr.msra.gmra.mrb[16].mxu0 %vm1112_vm5, %v7780_v11 }
 0x8a4   :  { %6882 = vmatprep.mubr.msk.f32.mxu0 %vm1112_vm5, %v6325_v43 }
 0x972   :  { %v6865_v12 = vpop.f32.mrb[14].mxu0 }
 0x973   :  { %v2022_v13 = vpop.f32.mrb[15].mxu0 }
 0x976   :  { %v6872_v14 = vpop.f32.mrb[16].mxu0 }
 0x977   :  { %v2107_v18 = vmax.f32 %v6865_v12, %v6872_v14  ;;  %v2097_v19 = vpop.f32.mrb[17].mxu0  ;;  %v2245_v14 = vld [vmem:[%s7812_s5 + $0x8] sm:$0xff] }
 0x978   :  { %v2106_v21 = vmax.f32 %v2022_v13, %v2097_v19  ;;  %v6333_v19 = vld [vmem:[%s7812_s5 + $0x20] sm:$0xff] }
 0x979   :  { %v2111_v22 = vsel %vm667_vm4, %v2107_v18, 0.0 }
 0x97a   :  { %2112 = vadd.xlane.f32.xlu1 %v2111_v22  ;;  %v2108_v23 = vsel %vm667_vm4, %v2106_v21, 0.0 }
 0x97b   :  { %2109 = vadd.xlane.f32.xlu0 %v2108_v23 }
 0x98b   :  { %2139 = vperm.xlu1 %7517, %v2135_v24  }
 0x98f   :  { %2153 = vperm.xlu1 %7517, %v2149_v25  }
 0x993   :  { %2158 = vperm.xlu1 %7517, %v2150_v26  }
 0x997   :  { %2581 = vperm.xlu1 %7517, %v2573_v27  }
 0xa07   :  { %v2113_v28 = vpop.xlane.xlu1 %2112 }
 0xa08   :  { %v2116_v30 = vmul.f32 0.125, %v2113_v28  ;;  %v2110_v31 = vpop.xlane.xlu0 %2109 }
 0xa09   :  { %v2115_v32 = vmul.f32 0.125, %v2110_v31 }
 0xa0a   :  { %v2118_v33 = vsub.f32 %v2107_v18, %v2116_v30 }
 0xa0b   :  { %v2117_v34 = vsub.f32 %v2106_v21, %v2115_v32  ;;  %v2140_v50 = vpop.permute.xlu1 %2139  ;;  %v6334_v21 = vld [vmem:[%s7812_s5 + $0x28] sm:$0xff]  ;;  %s7564_s5 = smov 41  }
 0xa0c   :  { %v2120_v35 = vmul.f32 %v2118_v33, %v2118_v33  ;;  %s6272_s8 = sld [smem:[%s8123_s0 + %s7564_s5]]  }
 0xa0d   :  { %v2119_v37 = vmul.f32 %v2117_v34, %v2117_v34 }
 0xa0e   :  { %v2124_v36 = vsel %vm667_vm4, %v2120_v35, 0.0  ;;  %v2629_v35 = vld [vmem:[%s6257_s14 + $0x8] sm:$0xff] }
 0xa0f   :  { %2125 = vadd.xlane.f32.xlu0 %v2124_v36  ;;  %v2121_v38 = vsel %vm667_vm4, %v2119_v37, 0.0  ;;  %v2154_v53 = vpop.permute.xlu1 %2153  ;;  %v3052_v36 = vld [vmem:[%s7844_s18 + $0x8] sm:$0xff] }
 0xa10   :  { %v3965_v37 = vld [vmem:[%s6262_s22 + $0x8] sm:$0xff] }
 0xa13   :  { %2122 = vadd.xlane.f32.xlu0 %v2121_v38  ;;  %v2159_v59 = vpop.permute.xlu1 %2158  ;;  %v4390_v38 = vld [vmem:[%s7853_s26 + $0x8] sm:$0xff] }
 0xa17   :  { %v2582_v22 = vpop.permute.xlu1 %2581 }
 0xa29   :  { %2144 = vperm.xlu0 %7516, %v2136_v39   ;;  %v5610_v39 = vld [vmem:[%s6269_s30] sm:$0xff]  ;;  %s7570_s30 = smov 12  }
 0xa2a   :  { %s6243_s3 = sld [smem:[%s8123_s0 + %s7570_s30]]  }
 0xa2d   :  { %2576 = vperm.xlu0 %7516, %v2572_v40  }
 0xa9c   :  { %v2126_v44 = vpop.xlane.xlu0 %2125 }
 0xa9d   :  { %v2128_v45 = vmul.f32 0.125, %v2126_v44 }
 0xa9f   :  { %v2130_v46 = vadd.f32 1e-05, %v2128_v45 }
 0xaa0   :  { %v2123_v47 = vpop.xlane.xlu0 %2122 }
 0xaa1   :  { %7518 = vrsqrt.f32 %v2130_v46  ;;  %v2127_v48 = vmul.f32 0.125, %v2123_v47 }
 0xaa3   :  { %v2129_v49 = vadd.f32 1e-05, %v2127_v48 }
 0xaa5   :  { %7520 = vrsqrt.f32 %v2129_v49 }
 0xaa8   :  { %v2145_v55 = vpop.permute.xlu0 %2144 }
 0xaab   :  { %v7519_v51 = vpop.eup %7518 }
 0xaac   :  { %v2134_v52 = vmul.f32 %v7519_v51, %v2118_v33  ;;  %v2577_v24 = vpop.permute.xlu0 %2576  ;;  %v2614_v33 = vld [vmem:[%s7835_s10] sm:$0xff] }
 0xaad   :  { %v3051_v51 = vld [vmem:[%s7844_s18] sm:$0xff]  ;;  %s7567_s18 = smov 29  }
 0xaae   :  { %v2148_v56 = vmul.f32 %v2145_v55, %v2134_v52  ;;  %v3964_v52 = vld [vmem:[%s6262_s22] sm:$0xff]  ;;  %s7902_s21 = sld [smem:[%s8123_s0 + %s7567_s18]]   ;;  %s7568_s22 = smov 30  }
 0xaaf   :  { %v7521_v54 = vpop.eup %7520  ;;  %v6213_v55 = vld [vmem:[%s6272_s8] sm:$0x3]  ;;  %s7934_s25 = sld [smem:[%s8123_s0 + %s7568_s22]]   ;;  %s7572_s8 = smov 35  }
 0xab0   :  { %v2133_v57 = vmul.f32 %v7521_v54, %v2117_v34  ;;  %v2162_v60 = vadd.f32 %v2159_v59, %v2148_v56  ;;  %v2628_v34 = vld [vmem:[%s6257_s14] sm:$0xff]  ;;  %s7566_s14 = smov 11   ;;  %s6266_s12 = sld [smem:[%s8123_s0 + %s7572_s8]]  }
 0xab1   :  { %v5234_v54 = vld [vmem:[%s6267_s4] sm:$0xff]  ;;  %s6242_s17 = sld [smem:[%s8123_s0 + %s7566_s14]]   ;;  %s7571_s4 = smov 34  }
 0xab2   :  { %v2147_v58 = vmul.f32 %v2140_v50, %v2133_v57  ;;  %v2615_v50 = vld [vmem:[%s7835_s10 + $0x8] sm:$0xff]  ;;  %s7565_s10 = smov 27   ;;  %s6265_s7 = sld [smem:[%s8123_s0 + %s7571_s4]]  }
 0xab3   :  { %s7873_s13 = sld [smem:[%s8123_s0 + %s7565_s10]]  }
 0xab4   :  { %v2161_v61 = vadd.f32 %v2154_v53, %v2147_v58  ;;  %v4389_v53 = vld [vmem:[%s7853_s26] sm:$0xff]  ;;  %s7569_s26 = smov 32  }
 0xab5   :  { %s7959_s29 = sld [smem:[%s8123_s0 + %s7569_s26]]  }
 0xab6   :  { %6875 = vmatprep.mubr.msk.f32.mxu1 %vm667_vm4, %v2161_v61  ;;  %v7291_v62 = vpack.c.bf16 %v2162_v60, %v2161_v61 }
 0xab7   :  { %6876 = vmatmul.mubr.msk.f32.vlgmr.msra.gmra.mrb[22].mxu1 %vm667_vm4, %v2162_v60 }
 0xab8   :  { %7292 = vmatprep.subr.bf16.mxu0 %v7291_v62  ;;  %6894 = vmatprep.mubr.msk.f32.mxu1 %vm667_vm4, %v2161_v61 }
 0xab9   :  { %7294 = vmatpush3.bf16.msra.mxu0 %v7291_v62  ;;  %6893 = vmatpush3.msra.mxu1 %v187_v42 }
 0xaba   :  { %6904 = vmatprep.subr.mxu1 %v186_v41 }
 0xabb   :  { %6895 = vmatmul.mubr.msk.f32.vlgmr.msra.gmra.mrb[24].mxu1 %vm667_vm4, %v2162_v60 }
 0xabc   :  { %6905 = vmatpush3.msra.mxu1 %v186_v41  ;;  %6883 = vmatmul.mubr.msk.f32.vlgmr.msra.gmra.mrb[18].mxu0 %vm1112_vm5, %v6326_v63 }
 0xabd   :  { %6889 = vmatprep.mubr.msk.f32.mxu0 %vm1112_vm5, %v2244_v2 }
 0xb8a   :  { %v6877_v3 = vpop.f32.mrb[22].mxu1 }
 0xb8b   :  { %v2235_v6 = vpop.f32.mrb[23].mxu1 }
 0xb8c   :  { %v7295_v7 = vpack.c.bf16 %v6877_v3, %v2235_v6 }
 0xb8e   :  { %7296 = vmatprep.subr.bf16.mxu0 %v7295_v7  ;;  %v6896_v12 = vpop.f32.mrb[24].mxu1 }
 0xb8f   :  { %7298 = vmatpush3.bf16.msra.mxu0 %v7295_v7  ;;  %v2477_v13 = vpop.f32.mrb[25].mxu1 }
 0xb90   :  { %v7299_v18 = vpack.c.bf16 %v6896_v12, %v2477_v13 }
 0xb92   :  { %6890 = vmatmul.mubr.msk.f32.vlgmr.msra.gmra.mrb[18].mxu0 %vm1112_vm5, %v2245_v14  ;;  %7300 = vmatprep.subr.bf16.mxu0 %v7299_v18 }
 0xb93   :  { %7302 = vmatpush3.bf16.msra.mxu0 %v7299_v18  ;;  %6901 = vmatprep.mubr.msk.f32.mxu0 %vm1112_vm5, %v6333_v19 }
 0xb94   :  { %6923 = vmatprep.subr.mxu0 %v187_v42 }
 0xb9a   :  { %6902 = vmatmul.mubr.msk.f32.vlgmr.msra.gmra.mrb[18].mxu0 %vm1112_vm5, %v6334_v21 }
 0xb9b   :  { %6924 = vmatpush3.msra.mxu0 %v187_v42 }
 0xc6d   :  { %v6903_v23 = vpop.f32.mrb[18].mxu0 }
 0xc6e   :  { %v2585_v25 = vadd.f32 %v6903_v23, %v2582_v22  ;;  %v2561_v26 = vpop.f32.mrb[19].mxu0  ;;  %v6339_v22 = vld [vmem:[%s7873_s13 + $0x10] sm:$0xff] }
 0xc6f   :  { %v2584_v27 = vadd.f32 %v2577_v24, %v2561_v26  ;;  %v6340_v24 = vld [vmem:[%s7873_s13 + $0x18] sm:$0xff] }
 0xc70   :  { %v2587_v28 = vmax.f32 %v2585_v25, 0.0  ;;  %v2723_v25 = vld [vmem:[%s7873_s13] sm:$0xff] }
 0xc71   :  { %v2586_v30 = vmax.f32 %v2584_v27, 0.0 }
 0xc72   :  { %v2591_v31 = vsel %vm667_vm4, %v2587_v28, 0.0 }
 0xc73   :  { %2592 = vadd.xlane.f32.xlu1 %v2591_v31  ;;  %v2588_v32 = vsel %vm667_vm4, %v2586_v30, 0.0 }
 0xc74   :  { %2589 = vadd.xlane.f32.xlu0 %v2588_v32 }
 0xc84   :  { %2618 = vperm.xlu1 %7517, %v2614_v33   ;;  %v2724_v33 = vld [vmem:[%s7873_s13 + $0x8] sm:$0xff] }
 0xc88   :  { %2632 = vperm.xlu1 %7517, %v2628_v34   ;;  %v6347_v34 = vld [vmem:[%s7873_s13 + $0x20] sm:$0xff] }
 0xc8c   :  { %2637 = vperm.xlu1 %7517, %v2629_v35   ;;  %v6348_v35 = vld [vmem:[%s7873_s13 + $0x28] sm:$0xff]  ;;  %s7573_s13 = smov 37  }
 0xc8d   :  { %s6268_s16 = sld [smem:[%s8123_s0 + %s7573_s13]]  }
 0xc90   :  { %3060 = vperm.xlu1 %7517, %v3052_v36   ;;  %v200_v36 = vld [vmem:[%s6242_s17] sm:$0xff]  ;;  %s7574_s17 = smov 39  }
 0xc91   :  { %6935 = vmatprep.subr.mxu0 %v200_v36  ;;  %s6270_s20 = sld [smem:[%s8123_s0 + %s7574_s17]]  }
 0xc94   :  { %3973 = vperm.xlu1 %7517, %v3965_v37  }
 0xc98   :  { %4398 = vperm.xlu1 %7517, %v4390_v38  }
 0xc9c   :  { %5613 = vperm.xlu1 %7517, %v5610_v39  }
 0xd00   :  { %v2593_v40 = vpop.xlane.xlu1 %2592 }
 0xd01   :  { %v2595_v41 = vmul.f32 0.125, %v2593_v40  ;;  %v2590_v42 = vpop.xlane.xlu0 %2589 }
 0xd02   :  { %v2594_v43 = vmul.f32 0.125, %v2590_v42 }
 0xd03   :  { %v2597_v44 = vsub.f32 %v2587_v28, %v2595_v41 }
 0xd04   :  { %v2596_v45 = vsub.f32 %v2586_v30, %v2594_v43  ;;  %v2619_v62 = vpop.permute.xlu1 %2618 }
 0xd05   :  { %v2599_v46 = vmul.f32 %v2597_v44, %v2597_v44 }
 0xd06   :  { %v2598_v48 = vmul.f32 %v2596_v45, %v2596_v45 }
 0xd07   :  { %v2603_v47 = vsel %vm667_vm4, %v2599_v46, 0.0 }
 0xd08   :  { %2604 = vadd.xlane.f32.xlu0 %v2603_v47  ;;  %v2600_v49 = vsel %vm667_vm4, %v2598_v48, 0.0  ;;  %v2633_v3 = vpop.permute.xlu1 %2632 }
 0xd0c   :  { %2601 = vadd.xlane.f32.xlu0 %v2600_v49  ;;  %v2638_v18 = vpop.permute.xlu1 %2637  ;;  %v6356_v49 = vld [vmem:[%s7902_s21 + $0x18] sm:$0xff] }
 0xd10   :  { %v3061_v37 = vpop.permute.xlu1 %3060 }
 0xd22   :  { %2623 = vperm.xlu0 %7516, %v2615_v50   ;;  %v3229_v50 = vld [vmem:[%s7902_s21] sm:$0xff] }
 0xd26   :  { %3055 = vperm.xlu0 %7516, %v3051_v51  }
 0xd2a   :  { %3968 = vperm.xlu0 %7516, %v3964_v52  }
 0xd2e   :  { %4393 = vperm.xlu0 %7516, %v4389_v53  }
 0xd32   :  { %5237 = vperm.xlu0 %7516, %v5234_v54  }
 0xd36   :  { %6216 = vperm.xlu0 %7516, %v6213_v55  }
 0xd95   :  { %v2605_v56 = vpop.xlane.xlu0 %2604 }
 0xd96   :  { %v2607_v57 = vmul.f32 0.125, %v2605_v56  ;;  %v3230_v56 = vld [vmem:[%s7902_s21 + $0x8] sm:$0xff] }
 0xd98   :  { %v2609_v58 = vadd.f32 1e-05, %v2607_v57 }
 0xd99   :  { %v2602_v59 = vpop.xlane.xlu0 %2601 }
 0xd9a   :  { %7522 = vrsqrt.f32 %v2609_v58  ;;  %v2606_v60 = vmul.f32 0.125, %v2602_v59  ;;  %v6363_v58 = vld [vmem:[%s7902_s21 + $0x20] sm:$0xff] }
 0xd9c   :  { %v2608_v61 = vadd.f32 1e-05, %v2606_v60 }
 0xd9e   :  { %7524 = vrsqrt.f32 %v2608_v61 }
 0xda1   :  { %v2624_v7 = vpop.permute.xlu0 %2623 }
 0xda4   :  { %v7523_v63 = vpop.eup %7522 }
 0xda5   :  { %v2613_v2 = vmul.f32 %v7523_v63, %v2597_v44  ;;  %v3056_v39 = vpop.permute.xlu0 %3055  ;;  %v6364_v63 = vld [vmem:[%s7902_s21 + $0x28] sm:$0xff] }
 0xda7   :  { %v2627_v12 = vmul.f32 %v2624_v7, %v2613_v2  ;;  %v3633_v7 = vld [vmem:[%s7934_s25 + $0x8] sm:$0xff] }
 0xda8   :  { %v7525_v6 = vpop.eup %7524 }
 0xda9   :  { %v2612_v13 = vmul.f32 %v7525_v6, %v2596_v45  ;;  %v2641_v19 = vadd.f32 %v2638_v18, %v2627_v12  ;;  %v6355_v45 = vld [vmem:[%s7902_s21 + $0x10] sm:$0xff]  ;;  %v7343_v6 = vpack.c.bf16 %v7780_v11, %v7778_v10  ;;  %s7575_s21 = smov 40  }
 0xdaa   :  { %v6371_v12 = vld [vmem:[%s7934_s25 + $0x10] sm:$0xff] }
 0xdab   :  { %v2626_v14 = vmul.f32 %v2619_v62, %v2612_v13  ;;  %v6372_v13 = vld [vmem:[%s7934_s25 + $0x18] sm:$0xff] }
 0xdad   :  { %v2640_v21 = vadd.f32 %v2633_v3, %v2626_v14  ;;  %v3632_v3 = vld [vmem:[%s7934_s25] sm:$0xff] }
 0xdae   :  { %v6377_v14 = vld [vmem:[%s7934_s25 + $0x20] sm:$0xff] }
 0xdaf   :  { %6906 = vmatprep.mubr.msk.f32.mxu1 %vm667_vm4, %v2640_v21  ;;  %6925 = vmatprep.mubr.msk.f32.mxu0 %vm667_vm4, %v2640_v21  ;;  %v7303_v23 = vpack.c.bf16 %v2641_v19, %v2640_v21 }
 0xdb0   :  { %6907 = vmatmul.mubr.msk.f32.vlgmr.msra.gmra.mrb[26].mxu1 %vm667_vm4, %v2641_v19  ;;  %6926 = vmatmul.mubr.msk.f32.vlgmr.msra.gmra.mrb[20].mxu0 %vm667_vm4, %v2641_v19  ;;  %v3969_v19 = vpop.permute.xlu0 %3968 }
 0xdb1   :  { %7304 = vmatprep.subr.bf16.mxu1 %v7303_v23  ;;  %6913 = vmatprep.mubr.msk.f32.mxu1 %vm1112_vm5, %v6339_v22 }
 0xdb2   :  { %7306 = vmatpush3.bf16.msra.mxu1 %v7303_v23  ;;  %6936 = vmatpush3.msra.mxu0 %v200_v36  ;;  %v4062_v36 = vld [vmem:[%s7959_s29 + $0x8] sm:$0xff] }
 0xdb3   :  { %7316 = vmatprep.subr.bf16.mxu0 %v7712_v8 }
 0xdb5   :  { %6914 = vmatmul.mubr.msk.f32.vlgmr.msra.gmra.mrb[28].mxu1 %vm1112_vm5, %v6340_v24 }
 0xdb6   :  { %6920 = vmatprep.mubr.msk.f32.mxu1 %vm1112_vm5, %v2723_v25 }
 0xe83   :  { %v6908_v26 = vpop.f32.mrb[26].mxu1  ;;  %v6927_v27 = vpop.f32.mrb[20].mxu0 }
 0xe84   :  { %v2714_v28 = vpop.f32.mrb[27].mxu1  ;;  %v2956_v30 = vpop.f32.mrb[21].mxu0 }
 0xe85   :  { %v7307_v31 = vpack.c.bf16 %v6908_v26, %v2714_v28  ;;  %v7311_v32 = vpack.c.bf16 %v6927_v27, %v2956_v30  ;;  %v6383_v26 = vld [vmem:[%s7959_s29 + $0x10] sm:$0xff]  ;;  %v6384_v27 = vld [vmem:[%s7959_s29 + $0x18] sm:$0xff]  ;;  %v4061_v28 = vld [vmem:[%s7959_s29] sm:$0xff] }
 0xe87   :  { %7308 = vmatprep.subr.bf16.mxu1 %v7307_v31 }
 0xe88   :  { %7310 = vmatpush3.bf16.msra.mxu1 %v7307_v31 }
 0xe89   :  { %7312 = vmatprep.subr.bf16.mxu1 %v7311_v32 }
 0xe8b   :  { %6921 = vmatmul.mubr.msk.f32.vlgmr.msra.gmra.mrb[28].mxu1 %vm1112_vm5, %v2724_v33 }
 0xe8c   :  { %7314 = vmatpush3.bf16.msra.mxu1 %v7311_v32  ;;  %6932 = vmatprep.mubr.msk.f32.mxu1 %vm1112_vm5, %v6347_v34 }
 0xe93   :  { %6933 = vmatmul.mubr.msk.f32.vlgmr.msra.gmra.mrb[28].mxu1 %vm1112_vm5, %v6348_v35 }
 0xe94   :  { %6951 = vmatprep.mubr.msk.f32.mxu1 %vm1112_vm5, %v6355_v45 }
 0xf66   :  { %v6934_v38 = vpop.f32.mrb[28].mxu1 }
 0xf67   :  { %v3064_v40 = vadd.f32 %v6934_v38, %v3061_v37  ;;  %v3040_v41 = vpop.f32.mrb[29].mxu1  ;;  %v6391_v37 = vld [vmem:[%s7959_s29 + $0x20] sm:$0xff]  ;;  %v6392_v38 = vld [vmem:[%s7959_s29 + $0x28] sm:$0xff] }
 0xf68   :  { %v3063_v42 = vadd.f32 %v3056_v39, %v3040_v41  ;;  %v201_v39 = vld [vmem:[%s6243_s3] sm:$0xff] }
 0xf69   :  { %v3066_v44 = vmax.f32 %v3064_v40, 0.0  ;;  %v202_v40 = vld [vmem:[%s6243_s3 + $0x8] sm:$0xff] }
 0xf6a   :  { %v3065_v43 = vmax.f32 %v3063_v42, 0.0  ;;  %v7375_v41 = vpack.c.bf16 %v202_v40, %v201_v39 }
 0xf6c   :  { %6937 = vmatprep.mubr.msk.f32.mxu0 %vm667_vm4, %v3065_v43 }
 0xf6d   :  { %6938 = vmatmul.mubr.msk.f32.vlgmr.msra.gmra.mrb[22].mxu0 %vm667_vm4, %v3066_v44  ;;  %v4394_v44 = vpop.permute.xlu0 %4393 }
 0xf6e   :  { %7318 = vmatpush3.bf16.msra.mxu0 %v7712_v8 }
 0xf6f   :  { %7328 = vmatprep.subr.bf16.mxu0 %v7726_v17 }
0x1040   :  { %v6939_v46 = vpop.f32.mrb[22].mxu0 }
0x1041   :  { %v3139_v47 = vpop.f32.mrb[23].mxu0 }
0x1042   :  { %v7319_v48 = vpack.c.bf16 %v6939_v46, %v3139_v47  ;;  %6944 = vmatprep.mubr.msk.f32.mxu0 %vm1112_vm5, %v3139_v47 }
0x1043   :  { %6945 = vmatmul.mubr.msk.f32.vlgmr.msra.gmra.mrb[24].mxu0 %vm1112_vm5, %v6939_v46 }
0x1044   :  { %7320 = vmatprep.subr.bf16.mxu1 %v7319_v48  ;;  %7330 = vmatpush3.bf16.msra.mxu0 %v7726_v17 }
0x1045   :  { %6965 = vmatprep.mubr.msk.f32.mxu0 %vm1112_vm5, %v3139_v47  ;;  %7322 = vmatpush3.bf16.msra.mxu1 %v7319_v48 }
0x1046   :  { %7336 = vmatprep.subr.bf16.mxu0 %v7712_v8 }
0x1047   :  { %6966 = vmatmul.mubr.msk.f32.vlgmr.msra.gmra.mrb[26].mxu0 %vm1112_vm5, %v6939_v46 }
0x1048   :  { %7338 = vmatpush3.bf16.msra.mxu0 %v7712_v8  ;;  %6979 = vmatprep.mubr.msk.f32.mxu0 %vm1112_vm5, %v7778_v10 }
0x1049   :  { %7348 = vmatprep.subr.bf16.mxu0 %v7726_v17  ;;  %6952 = vmatmul.mubr.msk.f32.vlgmr.msra.gmra.mrb[30].mxu1 %vm1112_vm5, %v6356_v49 }
0x104a   :  { %6958 = vmatprep.mubr.msk.f32.mxu1 %vm1112_vm5, %v3229_v50 }
0x104b   :  { %6980 = vmatmul.mubr.msk.f32.vlgmr.msra.gmra.mrb[28].mxu0 %vm1112_vm5, %v7780_v11 }
0x104c   :  { %7350 = vmatpush3.bf16.msra.mxu0 %v7726_v17  ;;  %7000 = vmatprep.mubr.msk.f32.mxu0 %vm1112_vm5, %v7778_v10  ;;  %v6378_v10 = vld [vmem:[%s7934_s25 + $0x28] sm:$0xff] }
0x104d   :  { %7356 = vmatprep.subr.bf16.mxu0 %v7712_v8 }
0x104f   :  { %7001 = vmatmul.mubr.msk.f32.vlgmr.msra.gmra.mrb[30].mxu0 %vm1112_vm5, %v7780_v11  ;;  %v3974_v11 = vpop.permute.xlu1 %3973 }
0x1050   :  { %7358 = vmatpush3.bf16.msra.mxu0 %v7712_v8 }
0x1053   :  { %v4399_v42 = vpop.permute.xlu1 %4398 }
0x1116   :  { %v6946_v51 = vpop.f32.mrb[24].mxu0 }
0x1117   :  { %v3220_v52 = vpop.f32.mrb[25].mxu0 }
0x1118   :  { %v7323_v53 = vpack.c.bf16 %v6946_v51, %v3220_v52 }
0x111a   :  { %7324 = vmatprep.subr.bf16.mxu1 %v7323_v53  ;;  %v6967_v54 = vpop.f32.mrb[26].mxu0 }
0x111b   :  { %7326 = vmatpush3.bf16.msra.mxu1 %v7323_v53  ;;  %v3462_v55 = vpop.f32.mrb[27].mxu0  ;;  %v6399_v53 = vld [vmem:[%s6265_s7 + $0x8] sm:$0xff] }
0x111c   :  { %v7331_v57 = vpack.c.bf16 %v6967_v54, %v3462_v55 }
0x111e   :  { %6959 = vmatmul.mubr.msk.f32.vlgmr.msra.gmra.mrb[30].mxu1 %vm1112_vm5, %v3230_v56  ;;  %7332 = vmatprep.subr.bf16.mxu1 %v7331_v57  ;;  %v6981_v8 = vpop.f32.mrb[28].mxu0 }
0x111f   :  { %7334 = vmatpush3.bf16.msra.mxu1 %v7331_v57  ;;  %v3623_v59 = vpop.f32.mrb[29].mxu0  ;;  %6972 = vmatprep.mubr.msk.f32.mxu1 %vm1112_vm5, %v6363_v58  ;;  %v4567_v57 = vld [vmem:[%s6265_s7] sm:$0xff] }
0x1120   :  { %v7339_v60 = vpack.c.bf16 %v6981_v8, %v3623_v59 }
0x1122   :  { %7340 = vmatprep.subr.bf16.mxu1 %v7339_v60  ;;  %v7002_v61 = vpop.f32.mrb[30].mxu0 }
0x1123   :  { %v3869_v62 = vpop.f32.mrb[31].mxu0 }
0x1124   :  { %v7351_v2 = vpack.c.bf16 %v7002_v61, %v3869_v62 }
0x1126   :  { %6973 = vmatmul.mubr.msk.f32.vlgmr.msra.gmra.mrb[30].mxu1 %vm1112_vm5, %v6364_v63 }
0x1127   :  { %7342 = vmatpush3.bf16.msra.mxu1 %v7339_v60  ;;  %6986 = vmatprep.mubr.msk.f32.mxu1 %vm1112_vm5, %v3632_v3  ;;  %v6404_v60 = vld [vmem:[%s6265_s7 + $0x10] sm:$0xff] }
0x1128   :  { %7344 = vmatprep.subr.bf16.mxu1 %v7343_v6 }
0x112e   :  { %6987 = vmatmul.mubr.msk.f32.vlgmr.msra.gmra.mrb[30].mxu1 %vm1112_vm5, %v3633_v7 }
0x112f   :  { %7346 = vmatpush3.bf16.msra.mxu1 %v7343_v6  ;;  %6993 = vmatprep.mubr.msk.f32.mxu1 %vm1112_vm5, %v6371_v12 }
0x1130   :  { %7352 = vmatprep.subr.bf16.mxu1 %v7351_v2 }
0x1136   :  { %6994 = vmatmul.mubr.msk.f32.vlgmr.msra.gmra.mrb[30].mxu1 %vm1112_vm5, %v6372_v13  ;;  %v4937_v13 = vld [vmem:[%s6266_s12] sm:$0xff] }
0x1137   :  { %7354 = vmatpush3.bf16.msra.mxu1 %v7351_v2  ;;  %7007 = vmatprep.mubr.msk.f32.mxu1 %vm1112_vm5, %v6377_v14 }
0x1138   :  { %7368 = vmatprep.subr.bf16.mxu1 %v7726_v17 }
0x113e   :  { %7008 = vmatmul.mubr.msk.f32.vlgmr.msra.gmra.mrb[30].mxu1 %vm1112_vm5, %v6378_v10 }
0x113f   :  { %7370 = vmatpush3.bf16.msra.mxu1 %v7726_v17 }
0x1140   :  { %7376 = vmatprep.subr.bf16.mxu1 %v7375_v41 }
0x1211   :  { %v7009_v18 = vpop.f32.mrb[30].mxu1 }
0x1212   :  { %v3977_v21 = vadd.f32 %v7009_v18, %v3974_v11  ;;  %v3953_v22 = vpop.f32.mrb[31].mxu1  ;;  %v6408_v11 = vld [vmem:[%s6266_s12 + $0x8] sm:$0xff]  ;;  %v6411_v18 = vld [vmem:[%s6266_s12 + $0x10] sm:$0xff] }
0x1213   :  { %v3976_v23 = vadd.f32 %v3969_v19, %v3953_v22 }
0x1214   :  { %v3979_v24 = vmax.f32 %v3977_v21, 0.0 }
0x1215   :  { %v3978_v25 = vmax.f32 %v3976_v23, 0.0 }
0x1217   :  { %7014 = vmatprep.mubr.msk.f32.mxu0 %vm1112_vm5, %v3978_v25  ;;  %7035 = vmatprep.mubr.msk.f32.mxu1 %vm1112_vm5, %v3978_v25  ;;  %v7359_v17 = vpack.c.bf16 %v3979_v24, %v3978_v25 }
0x1218   :  { %7015 = vmatmul.mubr.msk.f32.vlgmr.msra.gmra.mrb[32].mxu0 %vm1112_vm5, %v3979_v24  ;;  %7036 = vmatmul.mubr.msk.f32.vlgmr.msra.gmra.mrb[32].mxu1 %vm1112_vm5, %v3979_v24 }
0x1219   :  { %7360 = vmatprep.subr.bf16.mxu0 %v7359_v17  ;;  %7021 = vmatprep.mubr.msk.f32.mxu0 %vm1112_vm5, %v6383_v26 }
0x121a   :  { %7362 = vmatpush3.bf16.msra.mxu0 %v7359_v17  ;;  %7378 = vmatpush3.bf16.msra.mxu1 %v7375_v41 }
0x121b   :  { %7387 = vmatprep.subr.bf16.mxu1 %v7531_v0 }
0x121d   :  { %7022 = vmatmul.mubr.msk.f32.vlgmr.msra.gmra.mrb[34].mxu0 %vm1112_vm5, %v6384_v27 }
0x121e   :  { %7028 = vmatprep.mubr.msk.f32.mxu0 %vm1112_vm5, %v4061_v28 }
0x12eb   :  { %v7016_v30 = vpop.f32.mrb[32].mxu0  ;;  %v7037_v31 = vpop.f32.mrb[32].mxu1 }
0x12ec   :  { %v4052_v32 = vpop.f32.mrb[33].mxu0  ;;  %v4294_v33 = vpop.f32.mrb[33].mxu1 }
0x12ed   :  { %v7363_v34 = vpack.c.bf16 %v7016_v30, %v4052_v32  ;;  %v7371_v35 = vpack.c.bf16 %v7037_v31, %v4294_v33  ;;  %v5238_v30 = vpop.permute.xlu0 %5237  ;;  %v6414_v33 = vld [vmem:[%s6268_s16 + $0x8] sm:$0xff] }
0x12ef   :  { %7364 = vmatprep.subr.bf16.mxu0 %v7363_v34 }
0x12f0   :  { %7366 = vmatpush3.bf16.msra.mxu0 %v7363_v34  ;;  %v5315_v34 = vld [vmem:[%s6268_s16] sm:$0xff] }
0x12f1   :  { %7372 = vmatprep.subr.bf16.mxu0 %v7371_v35 }
0x12f3   :  { %7029 = vmatmul.mubr.msk.f32.vlgmr.msra.gmra.mrb[34].mxu0 %vm1112_vm5, %v4062_v36 }
0x12f4   :  { %7374 = vmatpush3.bf16.msra.mxu0 %v7371_v35  ;;  %7042 = vmatprep.mubr.msk.f32.mxu0 %vm1112_vm5, %v6391_v37  ;;  %v6418_v37 = vld [vmem:[%s6268_s16 + $0x10] sm:$0xff] }
0x12f5   :  { %7380 = vmatprep.subr.bf16.mxu0 %v7601_v5 }
0x12fb   :  { %7043 = vmatmul.mubr.msk.f32.vlgmr.msra.gmra.mrb[34].mxu0 %vm1112_vm5, %v6392_v38 }
0x12fc   :  { %7382 = vmatpush3.bf16.msra.mxu0 %v7601_v5 }
0x12fd   :  { %7384 = vmatprep.subr.bf16.mxu0 %v7607_v9 }
0x1300   :  { %7386 = vmatpush3.bf16.msra.mxu0 %v7607_v9 }
0x1301   :  { %7394 = vmatprep.subr.bf16.mxu0 %v7623_v15 }
0x13ce   :  { %v7044_v43 = vpop.f32.mrb[34].mxu0 }
0x13cf   :  { %v4402_v45 = vadd.f32 %v7044_v43, %v4399_v42  ;;  %v4378_v46 = vpop.f32.mrb[35].mxu0 }
0x13d0   :  { %v4401_v47 = vadd.f32 %v4394_v44, %v4378_v46 }
0x13d1   :  { %v4404_v49 = vmax.f32 %v4402_v45, 0.0 }
0x13d2   :  { %v4403_v48 = vmax.f32 %v4401_v47, 0.0 }
0x13d4   :  { %7049 = vmatprep.mubr.msk.f32.mxu1 %vm1112_vm5, %v4403_v48  ;;  %v5614_v48 = vpop.permute.xlu1 %5613 }
0x13d5   :  { %7050 = vmatmul.mubr.msk.f32.vlgmr.msra.gmra.mrb[34].mxu1 %vm1112_vm5, %v4404_v49 }
0x13d6   :  { %7067 = vmatprep.mubr.msk.f32.mxu1 %vm7533_vm0, %v7534_v1 }
0x14a8   :  { %v7051_v50 = vpop.f32.mrb[34].mxu1 }
0x14a9   :  { %v4477_v51 = vpop.f32.mrb[35].mxu1 }
0x14aa   :  { %v7388_v52 = vpack.c.bf16 %v7051_v50, %v4477_v51  ;;  %7060 = vmatprep.mubr.msk.f32.mxu0 %vm204_vm3, %v4477_v51 }
0x14ab   :  { %7061 = vmatmul.mubr.msk.f32.vlgmr.msra.gmra.mrb[36].mxu0 %vm204_vm3, %v7051_v50 }
0x14ac   :  { %7396 = vmatpush3.bf16.msra.mxu0 %v7623_v15  ;;  %7389 = vmatpush3.bf16.msra.mxu1 %v7388_v52  ;;  %v6425_v52 = vld [vmem:[%s6270_s20 + $0x4] sm:$0x3] }
0x14ad   :  { %7085 = vmatprep.mubr.msk.f32.mxu0 %vm204_vm3, %v4477_v51  ;;  %7398 = vmatprep.subr.bf16.mxu0 %v7632_v20 }
0x14ae   :  { %7390 = vmatprep.subr.bf16.mxu1 %v7531_v0 }
0x14af   :  { %7068 = vmatmul.mubr.msk.f32.vlgmr.msra.gmra.mrb[36].mxu1 %vm1112_vm5, %v6399_v53 }
0x14b0   :  { %7400 = vmatpush3.bf16.msra.mxu0 %v7632_v20  ;;  %7074 = vmatprep.mubr.msk.f32.mxu1 %vm7533_vm0, %v7534_v1 }
0x14b1   :  { %7106 = vmatprep.subr.mxu0 %v7534_v1 }
0x14b3   :  { %7086 = vmatmul.mubr.msk.f32.vlgmr.msra.gmra.mrb[38].mxu0 %vm204_vm3, %v7051_v50 }
0x14b4   :  { %7108 = vmatprep.mubr.msk.f32.mxu0 %vm7533_vm0, %v7534_v1 }
0x157e   :  { %v7062_v54 = vpop.f32.mrb[36].mxu0 }
0x157f   :  { %v4558_v55 = vpop.f32.mrb[37].mxu0 }
0x1580   :  { %v7391_v56 = vpack.c.bf16 %v7062_v54, %v4558_v55 }
0x1582   :  { %7392 = vmatpush3.bf16.msra.mxu1 %v7391_v56  ;;  %v4639_v61 = vpop.f32.mrb[36].mxu1 }
0x1583   :  { %7401 = vmatprep.subr.bf16.mxu1 %v7531_v0  ;;  %v7069_v62 = vpop.f32.mrb[37].mxu1 }
0x1585   :  { %7075 = vmatmul.mubr.msk.f32.vlgmr.msra.gmra.mrb[38].mxu1 %vm1112_vm5, %v4567_v57 }
0x1586   :  { %v7087_v58 = vpop.f32.mrb[38].mxu0  ;;  %7092 = vmatprep.mubr.msk.f32.mxu1 %vm7533_vm0, %v7534_v1 }
0x1587   :  { %v4782_v8 = vpop.f32.mrb[39].mxu0 }
0x1588   :  { %v7402_v59 = vpack.c.bf16 %v7087_v58, %v4782_v8 }
0x158a   :  { %7403 = vmatpush3.bf16.msra.mxu1 %v7402_v59 }
0x158b   :  { %7404 = vmatprep.subr.bf16.mxu1 %v7531_v0 }
0x158d   :  { %7093 = vmatmul.mubr.msk.f32.vlgmr.msra.gmra.mrb[40].mxu1 %vm1112_vm5, %v6404_v60 }
0x158e   :  { %7406 = vmatpush3.bf16.msra.mxu1 %v7601_v5  ;;  %7103 = vmatprep.mubr.msk.f32.mxu1 %vm7533_vm0, %v7534_v1 }
0x158f   :  { %7407 = vmatprep.subr.bf16.mxu1 %v7531_v0 }
0x1592   :  { %7409 = vmatpush3.bf16.msra.mxu1 %v7607_v9 }
0x1593   :  { %7410 = vmatprep.subr.bf16.mxu1 %v7531_v0 }
0x1595   :  { %7104 = vmatmul.mubr.msk.f32.vlgmr.msra.gmra.mrb[42].mxu1 %vm204_vm3, %v7701_v4 }
0x1596   :  { %7412 = vmatpush3.bf16.msra.mxu1 %v7623_v15  ;;  %7124 = vmatprep.mubr.msk.f32.mxu1 %vm7533_vm0, %v7534_v1 }
0x1597   :  { %7413 = vmatprep.subr.bf16.mxu1 %v7531_v0 }
0x159a   :  { %7415 = vmatpush3.bf16.msra.mxu1 %v7632_v20 }
0x159b   :  { %7143 = vmatprep.subr.mxu1 %v7534_v1 }
0x159d   :  { %7125 = vmatmul.mubr.msk.f32.vlgmr.msra.gmra.mrb[44].mxu1 %vm204_vm3, %v7701_v4 }
0x159e   :  { %7145 = vmatprep.mubr.msk.f32.mxu1 %vm7533_vm0, %v7534_v1 }
0x1658   :  { %v4712_v63 = vpop.f32.mrb[38].mxu1 }
0x1659   :  { %v4713_v2 = vadd.f32 %v4712_v63, %v4639_v61  ;;  %v7076_v3 = vpop.f32.mrb[39].mxu1 }
0x1660   :  { %v4862_v6 = vpop.f32.mrb[40].mxu1 }
0x1661   :  { %v4866_v7 = vadd.f32 %v4862_v6, %v4713_v2  ;;  %v7094_v12 = vpop.f32.mrb[41].mxu1 }
0x1668   :  { %v4933_v14 = vpop.f32.mrb[42].mxu1 }
0x1669   :  { %v7105_v10 = vpop.f32.mrb[43].mxu1  ;;  %7107 = vmatpush3.msra.mxu0 %v4933_v14  ;;  %v6217_v14 = vpop.permute.xlu0 %6216 }
0x166a   :  { %7109 = vmatmul.mubr.msk.f32.vlgmr.msra.gmra.mrb[40].mxu0 %vm667_vm4, %v4937_v13  ;;  %7111 = vmatprep.subr.mxu0 %v7534_v1 }
0x166b   :  { %7112 = vmatpush3.msra.mxu0 %v7701_v4  ;;  %7113 = vmatprep.mubr.msk.f32.mxu0 %vm7533_vm0, %v7534_v1 }
0x166c   :  { %7127 = vmatprep.subr.mxu0 %v7534_v1 }
0x166e   :  { %7114 = vmatmul.mubr.msk.f32.vlgmr.msra.gmra.mrb[42].mxu0 %vm667_vm4, %v6408_v11 }
0x166f   :  { %7129 = vmatprep.mubr.msk.f32.mxu0 %vm7533_vm0, %v7534_v1 }
0x1670   :  { %v5154_v19 = vpop.f32.mrb[44].mxu1 }
0x1671   :  { %v7126_v21 = vpop.f32.mrb[45].mxu1  ;;  %7128 = vmatpush3.msra.mxu0 %v5154_v19 }
0x1672   :  { %7130 = vmatmul.mubr.msk.f32.vlgmr.msra.gmra.mrb[44].mxu0 %vm667_vm4, %v6411_v18  ;;  %7416 = vmatprep.subr.bf16.mxu0 %v7531_v0 }
0x1673   :  { %7418 = vmatpush3.bf16.msra.mxu0 %v7601_v5  ;;  %7140 = vmatprep.mubr.msk.f32.mxu0 %vm7533_vm0, %v7534_v1 }
0x1674   :  { %7419 = vmatprep.subr.bf16.mxu0 %v7531_v0 }
0x1677   :  { %7421 = vmatpush3.bf16.msra.mxu0 %v7607_v9 }
0x1678   :  { %7422 = vmatprep.subr.bf16.mxu0 %v7531_v0 }
0x173d   :  { %v5007_v4 = vpop.f32.mrb[40].mxu0 }
0x173e   :  { %v5011_v22 = vadd.f32 %v5007_v4, %v4866_v7  ;;  %v7110_v23 = vpop.f32.mrb[41].mxu0 }
0x1741   :  { %v5083_v24 = vpop.f32.mrb[42].mxu0 }
0x1742   :  { %v5087_v25 = vadd.f32 %v5083_v24, %v5011_v22  ;;  %v7115_v26 = vpop.f32.mrb[43].mxu0 }
0x1745   :  { %v5229_v17 = vpop.f32.mrb[44].mxu0 }
0x1746   :  { %v5233_v27 = vadd.f32 %v5229_v17, %v5087_v25  ;;  %v7131_v28 = vpop.f32.mrb[45].mxu0 }
0x1748   :  { %v5240_v31 = vadd.f32 %v5238_v30, %v5233_v27 }
0x174a   :  { %v5241_v32 = vmax.f32 %v5240_v31, 0.0 }
0x174c   :  { %7141 = vmatmul.mubr.msk.f32.vlgmr.msra.gmra.mrb[46].mxu0 %vm204_vm3, %v5241_v32  ;;  %7144 = vmatpush3.msra.mxu1 %v5241_v32 }
0x174d   :  { %7424 = vmatpush3.bf16.msra.mxu0 %v7623_v15  ;;  %7161 = vmatprep.mubr.msk.f32.mxu0 %vm7533_vm0, %v7534_v1 }
0x174e   :  { %7425 = vmatprep.subr.bf16.mxu0 %v7531_v0  ;;  %7148 = vmatprep.subr.mxu1 %v7534_v1 }
0x174f   :  { %7146 = vmatmul.mubr.msk.f32.vlgmr.msra.gmra.mrb[46].mxu1 %vm667_vm4, %v6414_v33 }
0x1750   :  { %7150 = vmatprep.mubr.msk.f32.mxu1 %vm7533_vm0, %v7534_v1 }
0x1751   :  { %7427 = vmatpush3.bf16.msra.mxu0 %v7632_v20 }
0x1752   :  { %7180 = vmatprep.subr.mxu0 %v7534_v1 }
0x1754   :  { %7162 = vmatmul.mubr.msk.f32.vlgmr.msra.gmra.mrb[48].mxu0 %vm204_vm3, %v5241_v32 }
0x1755   :  { %7182 = vmatprep.mubr.msk.f32.mxu0 %vm7533_vm0, %v7534_v1 }
0x181f   :  { %v5311_v35 = vpop.f32.mrb[46].mxu0 }
0x1820   :  { %v7142_v36 = vpop.f32.mrb[47].mxu0  ;;  %7149 = vmatpush3.msra.mxu1 %v5311_v35 }
0x1821   :  { %7151 = vmatmul.mubr.msk.f32.vlgmr.msra.gmra.mrb[48].mxu1 %vm667_vm4, %v5315_v34  ;;  %7164 = vmatprep.subr.mxu1 %v7534_v1 }
0x1822   :  { %7166 = vmatprep.mubr.msk.f32.mxu1 %vm7533_vm0, %v7534_v1  ;;  %v5387_v40 = vpop.f32.mrb[46].mxu1 }
0x1823   :  { %v7147_v41 = vpop.f32.mrb[47].mxu1 }
0x1827   :  { %v5530_v38 = vpop.f32.mrb[48].mxu0 }
0x1828   :  { %v7163_v39 = vpop.f32.mrb[49].mxu0  ;;  %7165 = vmatpush3.msra.mxu1 %v5530_v38 }
0x1829   :  { %7167 = vmatmul.mubr.msk.f32.vlgmr.msra.gmra.mrb[50].mxu1 %vm667_vm4, %v6418_v37  ;;  %7428 = vmatprep.subr.bf16.mxu1 %v7531_v0 }
0x182a   :  { %7430 = vmatpush3.bf16.msra.mxu1 %v7601_v5  ;;  %7177 = vmatprep.mubr.msk.f32.mxu1 %vm7533_vm0, %v7534_v1 }
0x182b   :  { %7431 = vmatprep.subr.bf16.mxu1 %v7531_v0 }
0x182e   :  { %7433 = vmatpush3.bf16.msra.mxu1 %v7607_v9  ;;  %v7530_v9 = vld [vmem:[%s7591_s9] sm:$0xf]  ;;  %s6271_s9 = sld [smem:[%s8123_s0 + %s7575_s21]]  }
0x182f   :  { %7434 = vmatprep.subr.bf16.mxu1 %v7531_v0 }
0x1834   :  { %v5986_v55 = vld [vmem:[%s6271_s9] sm:$0x3]  ;;  %v6432_v56 = vld [vmem:[%s6271_s9 + $0x4] sm:$0x3] }
0x18f4   :  { %v5460_v42 = vpop.f32.mrb[48].mxu1 }
0x18f5   :  { %v5461_v43 = vadd.f32 %v5460_v42, %v5387_v40  ;;  %v7152_v44 = vpop.f32.mrb[49].mxu1 }
0x18fc   :  { %v5605_v45 = vpop.f32.mrb[50].mxu1 }
0x18fd   :  { %v5609_v46 = vadd.f32 %v5605_v45, %v5461_v43  ;;  %v7168_v47 = vpop.f32.mrb[51].mxu1 }
0x18ff   :  { %v5616_v5 = vadd.f32 %v5614_v48, %v5609_v46 }
0x1901   :  { %v5617_v49 = vmax.f32 %v5616_v5, 0.0 }
0x1903   :  { %7178 = vmatmul.mubr.msk.f32.vlgmr.msra.gmra.mrb[52].mxu1 %vm204_vm3, %v5617_v49  ;;  %7181 = vmatpush3.msra.mxu0 %v5617_v49 }
0x1904   :  { %7436 = vmatpush3.bf16.msra.mxu1 %v7623_v15  ;;  %7198 = vmatprep.mubr.msk.f32.mxu1 %vm7533_vm0, %v7534_v1  ;;  %v6429_v15 = vld [vmem:[%s6271_s9 + $0x2] sm:$0x3] }
0x1905   :  { %7437 = vmatprep.subr.bf16.mxu1 %v7531_v0  ;;  %7185 = vmatprep.subr.mxu0 %v7534_v1  ;;  %v6421_v0 = vld [vmem:[%s6270_s20 + $0x2] sm:$0x3] }
0x1906   :  { %7183 = vmatmul.mubr.msk.f32.vlgmr.msra.gmra.mrb[50].mxu0 %vm667_vm4, %v6421_v0 }
0x1907   :  { %7187 = vmatprep.mubr.msk.f32.mxu0 %vm7533_vm0, %v7534_v1 }
0x1908   :  { %7439 = vmatpush3.bf16.msra.mxu1 %v7632_v20  ;;  %v5691_v20 = vld [vmem:[%s6270_s20] sm:$0x3] }
0x1909   :  { %7211 = vmatprep.subr.mxu1 %v7534_v1 }
0x190b   :  { %7199 = vmatmul.mubr.msk.f32.vlgmr.msra.gmra.mrb[54].mxu1 %vm204_vm3, %v5617_v49 }
0x190c   :  { %7212 = vmatpush3.msk.msra.mxu1 %vm285_vm1, %v7530_v9  ;;  %7213 = vmatprep.mubr.msk.f32.mxu1 %vm7533_vm0, %v7534_v1 }
0x190f   :  { %7214 = vmatmul.mubr.msk.f32.vlgmr.msra.gmra.mrb[56].mxu1 %vm281_vm2, %v6429_v15 }
0x19d6   :  { %v5687_v50 = vpop.f32.mrb[52].mxu1 }
0x19d7   :  { %v7179_v51 = vpop.f32.mrb[53].mxu1  ;;  %7186 = vmatpush3.msra.mxu0 %v5687_v50 }
0x19d8   :  { %7188 = vmatmul.mubr.msk.f32.vlgmr.msra.gmra.mrb[52].mxu0 %vm667_vm4, %v5691_v20  ;;  %7201 = vmatprep.subr.mxu0 %v7534_v1 }
0x19d9   :  { %7203 = vmatprep.mubr.msk.f32.mxu0 %vm7533_vm0, %v7534_v1  ;;  %v5763_v57 = vpop.f32.mrb[50].mxu0 }
0x19da   :  { %v7184_v58 = vpop.f32.mrb[51].mxu0 }
0x19de   :  { %v5906_v53 = vpop.f32.mrb[54].mxu1 }
0x19df   :  { %v7200_v54 = vpop.f32.mrb[55].mxu1  ;;  %7202 = vmatpush3.msra.mxu0 %v5906_v53 }
0x19e0   :  { %7204 = vmatmul.mubr.msk.f32.vlgmr.msra.gmra.mrb[54].mxu0 %vm667_vm4, %v6425_v52  ;;  %7206 = vmatprep.subr.mxu0 %v7534_v1 }
0x19e1   :  { %7207 = vmatpush3.msk.msra.mxu0 %vm285_vm1, %v7625_v16  ;;  %7208 = vmatprep.mubr.msk.f32.mxu0 %vm7533_vm0, %v7534_v1 }
0x19e2   :  { %7216 = vmatprep.subr.mxu0 %v7534_v1  ;;  %v6132_v16 = vpop.f32.mrb[56].mxu1 }
0x19e3   :  { %v7215_v8 = vpop.f32.mrb[57].mxu1 }
0x19e4   :  { %7209 = vmatmul.mubr.msk.f32.vlgmr.msra.gmra.mrb[56].mxu0 %vm281_vm2, %v5986_v55 }
0x19e5   :  { %7217 = vmatpush3.msk.msra.mxu0 %vm285_vm1, %v7655_v29  ;;  %7218 = vmatprep.mubr.msk.f32.mxu0 %vm7533_vm0, %v7534_v1 }
0x19e8   :  { %7219 = vmatmul.mubr.msk.f32.vlgmr.msra.gmra.mrb[58].mxu0 %vm281_vm2, %v6432_v56 }
0x1aab   :  { %v5836_v59 = vpop.f32.mrb[52].mxu0 }
0x1aac   :  { %v5837_v60 = vadd.f32 %v5836_v59, %v5763_v57  ;;  %v7189_v61 = vpop.f32.mrb[53].mxu0 }
0x1ab3   :  { %v5981_v62 = vpop.f32.mrb[54].mxu0 }
0x1ab4   :  { %v5985_v63 = vadd.f32 %v5981_v62, %v5837_v60  ;;  %v7205_v2 = vpop.f32.mrb[55].mxu0 }
0x1ab7   :  { %v6056_v3 = vpop.f32.mrb[56].mxu0 }
0x1ab8   :  { %v6060_v6 = vadd.f32 %v6056_v3, %v5985_v63  ;;  %v7210_v7 = vpop.f32.mrb[57].mxu0 }
0x1aba   :  { %v6136_v29 = vadd.f32 %v6132_v16, %v6060_v6 }
0x1abb   :  { %v6208_v12 = vpop.f32.mrb[58].mxu0 }
0x1abc   :  { %v6212_v13 = vadd.f32 %v6208_v12, %v6136_v29  ;;  %v7220_v1 = vpop.f32.mrb[59].mxu0 }
0x1abe   :  { %v6219_v10 = vadd.f32 %v6217_v14, %v6212_v13 }
0x1ac0   :  { %v6435_v11 = vmul.f32 -1.442695, %v6219_v10 }
0x1ac2   :  { %7526 = vpow2.f32 %v6435_v11 }
0x1acc   :  { %v7527_v18 = vpop.eup %7526 }
0x1acd   :  { %v6223_v19 = vadd.f32 1.0, %v7527_v18 }
0x1acf   :  { %7528 = vrcp.f32 %v6223_v19 }
0x1ad9   :  { %v7529_v21 = vpop.eup %7528 }
0x1ada   :  { %6227 = vst.msk [vmem:[%s6273_s27] sm:$0x3] %vm6226_vm6, %v7529_v21 }

</bundles_post_ra>
